<compile_context>
chip_gen: v6e
topology: v6e:2x2x1
jax: 0.10.0
libtpu: 0.0.40
codegen_flags: <defaults>
</compile_context>

<pallas_src>
import math

import jax
import jax.numpy as jnp
from jax.experimental import pallas as pl
from jax.experimental.pallas import tpu as pltpu

# ----------------------- small synthetic RoBERTa config -----------------------
B, S = 2, 8            # batch, sequence length
H = 32                 # hidden size
N_HEADS = 2
D_HEAD = H // N_HEADS
N_LAYERS = 2
FFN = 64               # intermediate size
VOCAB = 100
MAX_POS = 64
NUM_CLASSES = 3
PAD_IDX = 1            # RoBERTa padding_idx
LN_EPS = 1e-5

# ---- packed small-parameter layouts (static column offsets) ------------------
# per-layer buffer small_l: (L, 352)
_BQKV0, _BQKV1 = 0, 3 * H                 # packed QKV bias        (96)
_BO0,   _BO1   = _BQKV1, _BQKV1 + H       # attn out-proj bias     (32)
_LN1G0, _LN1G1 = _BO1, _BO1 + H           # post-attn LN gamma     (32)
_LN1B0, _LN1B1 = _LN1G1, _LN1G1 + H       # post-attn LN beta      (32)
_B10,   _B11   = _LN1B1, _LN1B1 + FFN     # FFN up bias            (64)
_B20,   _B21   = _B11, _B11 + H           # FFN down bias          (32)
_LN2G0, _LN2G1 = _B21, _B21 + H           # post-FFN LN gamma      (32)
_LN2B0, _LN2B1 = _LN2G1, _LN2G1 + H       # post-FFN LN beta       (32)
SMALL_L_W = _LN2B1                        # = 352
# global buffer small_g: (1, 99)
_EG0, _EG1 = 0, H                         # embedding LN gamma
_EB0, _EB1 = _EG1, _EG1 + H               # embedding LN beta
_BP0, _BP1 = _EB1, _EB1 + H               # pooler bias
_BC0, _BC1 = _BP1, _BP1 + NUM_CLASSES     # classifier bias
SMALL_G_W = _BC1                          # = 99


# ------------------------------ fused Pallas kernel ----------------------------
def _roberta_fused_kernel(
    # inputs
    x_ref,                       # (B*S, H)        summed embeddings, f32
    mask_ref,                    # (B*NH, 1, S)    additive attention mask, f32
    onehot_ref,                  # (B, C)          one-hot labels, f32
    wqkv_ref,                    # (L, H, 3H)      packed Q|K|V weights, bf16
    wo_ref,                      # (L, H, H)       bf16
    w1_ref,                      # (L, H, FFN)     bf16
    w2_ref,                      # (L, FFN, H)     bf16
    whead_ref,                   # (H, H+C)        pooler | classifier, bf16
    sl_ref,                      # (L, 352)        packed per-layer biases/LN, f32
    sg_ref,                      # (1, 99)         packed global biases/LN, f32
    # outputs
    logits_ref,                  # (B, C)
    loss_ref,                    # (1, 1)
):
    f32 = jnp.float32
    bf16 = jnp.bfloat16
    inv_h = 1.0 / H

    def ln(v, g, b):
        mu = jnp.sum(v, axis=-1, keepdims=True) * inv_h
        d = v - mu
        var = jnp.sum(d * d, axis=-1, keepdims=True) * inv_h
        return d * jax.lax.rsqrt(var + LN_EPS) * g + b

    # embedding LayerNorm (residual-free)
    x = ln(x_ref[...], sg_ref[0:1, _EG0:_EG1], sg_ref[0:1, _EB0:_EB1])

    # additive mask per (batch*head) row; prepared in the wrapper, loaded once
    # (loop-invariant, hoisted out of the layer loop).
    # TODO(synk): a fully-padded sequence would make every key masked and give a
    # degenerate softmax row; not guarded here (inputs always keep >=1 token).
    mask3 = mask_ref[...]                                   # (B*NH, 1, S)

    # ----------------------------- encoder layers -----------------------------
    for l in range(N_LAYERS):                               # static unroll
        h_in = x
        # packed QKV projection (bf16 weights, f32 accumulate). 1/sqrt(d_head)
        # is folded into the Q weight/bias columns at pack time.
        qkv = jnp.dot(h_in.astype(bf16), wqkv_ref[l],
                      preferred_element_type=f32) + sl_ref[l:l + 1, _BQKV0:_BQKV1]

        # split into per-(batch, head) (S, D_HEAD) tiles stacked on a leading
        # batch axis -> one batched score matmul, one softmax, one batched p@v.
        def heads(col0):
            return jnp.stack(
                [qkv[b * S:(b + 1) * S,
                     col0 + h * D_HEAD:col0 + (h + 1) * D_HEAD]
                 for b in range(B) for h in range(N_HEADS)], axis=0)  # (B*NH,S,DH)

        q3 = heads(0)
        k3 = heads(H)
        v3 = heads(2 * H)

        s = jnp.einsum("bqd,bkd->bqk", q3, k3,
                       preferred_element_type=f32) + mask3            # (B*NH,S,S)
        s_max = jnp.max(s, axis=-1, keepdims=True)
        e = jnp.exp(s - s_max)
        p = e * pl.reciprocal(jnp.sum(e, axis=-1, keepdims=True), approx=True)
        ctx3 = jnp.einsum("bqk,bkd->bqd", p, v3,
                          preferred_element_type=f32)                 # (B*NH,S,DH)

        # merge heads back to (B*S, H) entirely in registers (no VMEM scratch).
        ctx = jnp.concatenate(
            [jnp.concatenate([ctx3[b * N_HEADS + h] for h in range(N_HEADS)],
                             axis=-1)
             for b in range(B)], axis=0)                              # (B*S, H)

        attn = jnp.dot(ctx.astype(bf16), wo_ref[l],
                       preferred_element_type=f32) + sl_ref[l:l + 1, _BO0:_BO1]
        x = ln(attn + h_in,
               sl_ref[l:l + 1, _LN1G0:_LN1G1], sl_ref[l:l + 1, _LN1B0:_LN1B1])

        ff = jnp.dot(x.astype(bf16), w1_ref[l],
                     preferred_element_type=f32) + sl_ref[l:l + 1, _B10:_B11]
        # TODO(synk): HF RoBERTa uses exact erf-GELU; tanh approximation used here.
        ff = jax.nn.gelu(ff, approximate=True)
        ff = jnp.dot(ff.astype(bf16), w2_ref[l],
                     preferred_element_type=f32) + sl_ref[l:l + 1, _B20:_B21]
        x = ln(ff + x,
               sl_ref[l:l + 1, _LN2G0:_LN2G1], sl_ref[l:l + 1, _LN2B0:_LN2B1])

    # ------------------------- pooler + classifier ----------------------------
    # Gather the B CLS rows into one (B, H) tile: 2 matmuls + 1 logits store.
    # TODO(synk): nn.Dropout is identity in eval mode; training dropout omitted.
    cls = jnp.concatenate([x[b * S:b * S + 1, :] for b in range(B)], axis=0)  # (B,H)
    pooled = jnp.tanh(
        jnp.dot(cls.astype(bf16), whead_ref[:, 0:H],
                preferred_element_type=f32) + sg_ref[0:1, _BP0:_BP1])
    logits = jnp.dot(pooled.astype(bf16), whead_ref[:, H:H + NUM_CLASSES],
                     preferred_element_type=f32) + sg_ref[0:1, _BC0:_BC1]
    logits_ref[...] = logits

    # -------------------- softmax cross-entropy (mean over B) -----------------
    # TODO(synk): loss kept as a (1,1) VMEM output; an SMEM scalar store of a
    # vector reduction is not reliably lowerable, and the cost is one tiny store.
    m = jnp.max(logits, axis=-1, keepdims=True)
    lse = jnp.log(jnp.sum(jnp.exp(logits - m), axis=-1, keepdims=True)) + m
    nll = -jnp.sum(onehot_ref[...] * (logits - lse), axis=-1, keepdims=True)   # (B,1)
    loss_ref[...] = jnp.sum(nll, axis=0, keepdims=True) * (1.0 / B)            # (1,1)


def roberta_fused(x, mask3, onehot, p):
    def vspec(shape):
        nd = len(shape)
        return pl.BlockSpec(shape, lambda i, nd=nd: (0,) * nd)

    inputs = (
        x, mask3, onehot,
        p["wqkv"], p["wo"], p["w1"], p["w2"], p["whead"],
        p["small_l"], p["small_g"],
    )
    logits, loss = pl.pallas_call(
        _roberta_fused_kernel,
        out_shape=(
            jax.ShapeDtypeStruct((B, NUM_CLASSES), jnp.float32),
            jax.ShapeDtypeStruct((1, 1), jnp.float32),
        ),
        grid=(1,),                       # single step; no useful parallel axis
        in_specs=[vspec(a.shape) for a in inputs],
        out_specs=(vspec((B, NUM_CLASSES)), vspec((1, 1))),
        # Whole working set (<40 KB bf16 weights + ~2 KB activations) is <<1% of
        # VMEM on v5e/v6e (128 MiB) and v7x (64 MiB).  When scaling to real
        # RoBERTa-base, add an L ("arbitrary") grid axis with per-layer
        # BlockSpecs + vmem_limit_bytes, and a leading "parallel" batch axis.
        compiler_params=pltpu.CompilerParams(dimension_semantics=("arbitrary",)),
    )(*inputs)
    return logits, loss


# ------------------------------ parameter init --------------------------------
def init_params(key):
    def nxt():
        nonlocal key
        key, sub = jax.random.split(key)
        return sub

    def dense(k_in, k_out):
        return jax.random.normal(nxt(), (k_in, k_out), jnp.float32) * 0.02

    p = {}
    p["word_emb"] = jax.random.normal(nxt(), (VOCAB, H), jnp.float32) * 0.02
    p["pos_emb"] = jax.random.normal(nxt(), (MAX_POS, H), jnp.float32) * 0.02
    p["type_emb"] = jax.random.normal(nxt(), (1, H), jnp.float32) * 0.02
    p["emb_ln_g"] = jnp.ones((1, H), jnp.float32)
    p["emb_ln_b"] = jnp.zeros((1, H), jnp.float32)

    wqkv, wo, w1, w2 = [], [], [], []
    for _ in range(N_LAYERS):
        wq, wk, wv = dense(H, H), dense(H, H), dense(H, H)
        wqkv.append(jnp.concatenate([wq, wk, wv], axis=1))   # packed (H, 3H)
        wo.append(dense(H, H))
        w1.append(dense(H, FFN))
        w2.append(dense(FFN, H))
    p["wqkv"] = jnp.stack(wqkv)                              # (L, H, 3H)
    p["bqkv"] = jnp.zeros((N_LAYERS, 1, 3 * H), jnp.float32)
    p["wo"] = jnp.stack(wo)                                  # (L, H, H)
    p["bo"] = jnp.zeros((N_LAYERS, 1, H), jnp.float32)
    p["ln1_g"] = jnp.ones((N_LAYERS, 1, H), jnp.float32)
    p["ln1_b"] = jnp.zeros((N_LAYERS, 1, H), jnp.float32)
    p["w1"] = jnp.stack(w1)                                  # (L, H, FFN)
    p["b1"] = jnp.zeros((N_LAYERS, 1, FFN), jnp.float32)
    p["w2"] = jnp.stack(w2)                                  # (L, FFN, H)
    p["b2"] = jnp.zeros((N_LAYERS, 1, H), jnp.float32)
    p["ln2_g"] = jnp.ones((N_LAYERS, 1, H), jnp.float32)
    p["ln2_b"] = jnp.zeros((N_LAYERS, 1, H), jnp.float32)
    p["wp"] = dense(H, H)                                    # pooler
    p["bp"] = jnp.zeros((1, H), jnp.float32)
    p["wc"] = dense(H, NUM_CLASSES)                          # classifier (self.fc)
    p["bc"] = jnp.zeros((1, NUM_CLASSES), jnp.float32)
    return p


def pack_params(p):
    """One-time packing: fold 1/sqrt(d_head) into Q, bf16 weights, fused small bufs."""
    scale = 1.0 / math.sqrt(D_HEAD)
    wqkv = p["wqkv"].at[:, :, :H].multiply(scale)            # fold scale into Wq
    bqkv = p["bqkv"].at[:, :, :H].multiply(scale)            # ... and into bq
    small_l = jnp.concatenate(                               # (L, 352) f32
        [bqkv[:, 0, :], p["bo"][:, 0, :],
         p["ln1_g"][:, 0, :], p["ln1_b"][:, 0, :],
         p["b1"][:, 0, :], p["b2"][:, 0, :],
         p["ln2_g"][:, 0, :], p["ln2_b"][:, 0, :]], axis=1)
    small_g = jnp.concatenate(                               # (1, 99) f32
        [p["emb_ln_g"], p["emb_ln_b"], p["bp"], p["bc"]], axis=1)
    assert small_l.shape == (N_LAYERS, SMALL_L_W)
    assert small_g.shape == (1, SMALL_G_W)
    return {
        "word_emb": p["word_emb"], "pos_emb": p["pos_emb"], "type_emb": p["type_emb"],
        "wqkv": wqkv.astype(jnp.bfloat16),
        "wo": p["wo"].astype(jnp.bfloat16),
        "w1": p["w1"].astype(jnp.bfloat16),
        "w2": p["w2"].astype(jnp.bfloat16),
        "whead": jnp.concatenate([p["wp"], p["wc"]], axis=1).astype(jnp.bfloat16),
        "small_l": small_l,
        "small_g": small_g,
    }


# --------------------------------- forward ------------------------------------
@jax.jit
def roberta_forward(params, input_ids, attention_mask, labels):
    mask_f = attention_mask.astype(jnp.float32)

    # RoBERTa padding-aware position ids (padding_idx = 1)
    pos_ids = (jnp.cumsum(attention_mask, axis=1) * attention_mask).astype(jnp.int32) + PAD_IDX

    # embedding gathers stay in plain JAX (data-dependent gather)
    emb = (params["word_emb"][input_ids]
           + params["pos_emb"][pos_ids]
           + params["type_emb"][0][None, None, :])
    x = emb.reshape(B * S, H)

    # additive mask, broadcast to (B*N_HEADS, 1, S) once here (not per layer)
    add_mask = (1.0 - mask_f) * -1e9
    mask3 = jnp.broadcast_to(add_mask[:, None, :], (B, N_HEADS, S)).reshape(
        B * N_HEADS, 1, S)
    onehot = jax.nn.one_hot(labels.flatten(), NUM_CLASSES, dtype=jnp.float32)

    logits, loss = roberta_fused(x, mask3, onehot, params)
    return {"loss": loss[0, 0], "logits": logits}


# ----------------------------------- main --------------------------------------
if __name__ == "__main__":
    key = jax.random.PRNGKey(0)
    pkey, ikey, lkey = jax.random.split(key, 3)

    params = pack_params(init_params(pkey))

    input_ids = jax.random.randint(ikey, (B, S), 3, VOCAB, dtype=jnp.int32)
    attention_mask = jnp.ones((B, S), jnp.int32).at[1, 6:].set(0)   # pad last 2 tokens of sample 1
    input_ids = jnp.where(attention_mask == 1, input_ids, PAD_IDX)
    labels = jax.random.randint(lkey, (B,), 0, NUM_CLASSES, dtype=jnp.int32)

    out = roberta_forward(params, input_ids, attention_mask, labels)
    jax.block_until_ready(out)
    assert out["logits"].shape == (B, NUM_CLASSES)
    assert out["loss"].shape == ()
    assert bool(jnp.isfinite(out["loss"]))
    print("KERNEL_OK")
</pallas_src>

<mosaic_0001>
module attributes {stable_mosaic.version = 11 : i64} {
  func.func @_roberta_fused_kernel(%arg0: i32, %arg1: memref<16x32xf32, #tpu.memory_space<vmem>>, %arg2: memref<4x1x8xf32, #tpu.memory_space<vmem>>, %arg3: memref<2x3xf32, #tpu.memory_space<vmem>>, %arg4: memref<2x32x96xbf16, #tpu.memory_space<vmem>>, %arg5: memref<2x32x32xbf16, #tpu.memory_space<vmem>>, %arg6: memref<2x32x64xbf16, #tpu.memory_space<vmem>>, %arg7: memref<2x64x32xbf16, #tpu.memory_space<vmem>>, %arg8: memref<32x35xbf16, #tpu.memory_space<vmem>>, %arg9: memref<2x352xf32, #tpu.memory_space<vmem>>, %arg10: memref<1x99xf32, #tpu.memory_space<vmem>>, %arg11: memref<2x3xf32, #tpu.memory_space<vmem>>, %arg12: memref<1x1xf32, #tpu.memory_space<vmem>>) attributes {dimension_semantics = [#tpu.dimension_semantics<arbitrary>], iteration_bounds = array<i64: 1>, scalar_prefetch = 0 : i64, scratch_operands = 0 : i64, tpu.core_type = #tpu.core_type<tc>, window_params = [{pipeline_mode = #tpu.pipeline_mode<synchronous>, transform_indices = @transform_0, window_bounds = array<i64: 16, 32>}, {pipeline_mode = #tpu.pipeline_mode<synchronous>, transform_indices = @transform_1, window_bounds = array<i64: 4, 1, 8>}, {pipeline_mode = #tpu.pipeline_mode<synchronous>, transform_indices = @transform_2, window_bounds = array<i64: 2, 3>}, {pipeline_mode = #tpu.pipeline_mode<synchronous>, transform_indices = @transform_3, window_bounds = array<i64: 2, 32, 96>}, {pipeline_mode = #tpu.pipeline_mode<synchronous>, transform_indices = @transform_4, window_bounds = array<i64: 2, 32, 32>}, {pipeline_mode = #tpu.pipeline_mode<synchronous>, transform_indices = @transform_5, window_bounds = array<i64: 2, 32, 64>}, {pipeline_mode = #tpu.pipeline_mode<synchronous>, transform_indices = @transform_6, window_bounds = array<i64: 2, 64, 32>}, {pipeline_mode = #tpu.pipeline_mode<synchronous>, transform_indices = @transform_7, window_bounds = array<i64: 32, 35>}, {pipeline_mode = #tpu.pipeline_mode<synchronous>, transform_indices = @transform_8, window_bounds = array<i64: 2, 352>}, {pipeline_mode = #tpu.pipeline_mode<synchronous>, transform_indices = @transform_9, window_bounds = array<i64: 1, 99>}, {pipeline_mode = #tpu.pipeline_mode<synchronous>, transform_indices = @transform_10, window_bounds = array<i64: 2, 3>}, {pipeline_mode = #tpu.pipeline_mode<synchronous>, transform_indices = @transform_11, window_bounds = array<i64: 1, 1>}]} {
    %c0 = arith.constant 0 : index
    %c0_0 = arith.constant 0 : index
    %0 = vector.load %arg1[%c0, %c0_0] : memref<16x32xf32, #tpu.memory_space<vmem>>, vector<16x32xf32>
    %c0_1 = arith.constant 0 : index
    %c0_2 = arith.constant 0 : index
    %1 = vector.load %arg10[%c0_1, %c0_2] : memref<1x99xf32, #tpu.memory_space<vmem>>, vector<1x32xf32>
    %c0_3 = arith.constant 0 : index
    %c32 = arith.constant 32 : index
    %2 = vector.load %arg10[%c0_3, %c32] : memref<1x99xf32, #tpu.memory_space<vmem>>, vector<1x32xf32>
    %cst = arith.constant dense<0.000000e+00> : vector<16xf32>
    %3 = vector.multi_reduction <add>, %0, %cst [1] : vector<16x32xf32> to vector<16xf32>
    %4 = vector.shape_cast %3 : vector<16xf32> to vector<16x1xf32>
    %cst_4 = arith.constant 3.125000e-02 : f32
    %5 = vector.broadcast %cst_4 : f32 to vector<16x1xf32>
    %6 = arith.mulf %4, %5 : vector<16x1xf32>
    %7 = vector.broadcast %6 : vector<16x1xf32> to vector<16x32xf32>
    %8 = arith.subf %0, %7 : vector<16x32xf32>
    %9 = arith.mulf %8, %8 : vector<16x32xf32>
    %cst_5 = arith.constant dense<0.000000e+00> : vector<16xf32>
    %10 = vector.multi_reduction <add>, %9, %cst_5 [1] : vector<16x32xf32> to vector<16xf32>
    %11 = vector.shape_cast %10 : vector<16xf32> to vector<16x1xf32>
    %cst_6 = arith.constant 3.125000e-02 : f32
    %12 = vector.broadcast %cst_6 : f32 to vector<16x1xf32>
    %13 = arith.mulf %11, %12 : vector<16x1xf32>
    %cst_7 = arith.constant 9.99999974E-6 : f32
    %14 = vector.broadcast %cst_7 : f32 to vector<16x1xf32>
    %15 = arith.addf %13, %14 : vector<16x1xf32>
    %16 = math.rsqrt %15 : vector<16x1xf32>
    %17 = vector.broadcast %16 : vector<16x1xf32> to vector<16x32xf32>
    %18 = arith.mulf %8, %17 : vector<16x32xf32>
    %19 = vector.broadcast %1 : vector<1x32xf32> to vector<16x32xf32>
    %20 = arith.mulf %18, %19 : vector<16x32xf32>
    %21 = vector.broadcast %2 : vector<1x32xf32> to vector<16x32xf32>
    %22 = arith.addf %20, %21 : vector<16x32xf32>
    %c0_8 = arith.constant 0 : index
    %c0_9 = arith.constant 0 : index
    %c0_10 = arith.constant 0 : index
    %23 = vector.load %arg2[%c0_8, %c0_9, %c0_10] : memref<4x1x8xf32, #tpu.memory_space<vmem>>, vector<4x1x8xf32>
    %24 = arith.truncf %22 : vector<16x32xf32> to vector<16x32xbf16>
    %c0_11 = arith.constant 0 : index
    %c0_12 = arith.constant 0 : index
    %c0_13 = arith.constant 0 : index
    %25 = vector.load %arg4[%c0_11, %c0_12, %c0_13] : memref<2x32x96xbf16, #tpu.memory_space<vmem>>, vector<1x32x96xbf16>
    %26 = vector.shape_cast %25 : vector<1x32x96xbf16> to vector<32x96xbf16>
    %cst_14 = arith.constant dense<0.000000e+00> : vector<16x96xf32>
    %27 = tpu.matmul %24, %26, %cst_14 {dimension_numbers = #tpu.dot_dimension_numbers<[1], [0], [0], [1], [0, 0, 1, 1], [], []>} : vector<16x32xbf16>, vector<32x96xbf16>, vector<16x96xf32> -> vector<16x96xf32>
    %c0_15 = arith.constant 0 : index
    %c0_16 = arith.constant 0 : index
    %28 = vector.load %arg9[%c0_15, %c0_16] : memref<2x352xf32, #tpu.memory_space<vmem>>, vector<1x96xf32>
    %29 = vector.broadcast %28 : vector<1x96xf32> to vector<16x96xf32>
    %30 = arith.addf %27, %29 : vector<16x96xf32>
    %31 = vector.extract_strided_slice %30 {offsets = [0, 0], sizes = [8, 16], strides = [1, 1]} : vector<16x96xf32> to vector<8x16xf32>
    %32 = vector.extract_strided_slice %30 {offsets = [0, 16], sizes = [8, 16], strides = [1, 1]} : vector<16x96xf32> to vector<8x16xf32>
    %33 = vector.extract_strided_slice %30 {offsets = [8, 0], sizes = [8, 16], strides = [1, 1]} : vector<16x96xf32> to vector<8x16xf32>
    %34 = vector.extract_strided_slice %30 {offsets = [8, 16], sizes = [8, 16], strides = [1, 1]} : vector<16x96xf32> to vector<8x16xf32>
    %35 = vector.shape_cast %31 : vector<8x16xf32> to vector<1x8x16xf32>
    %36 = vector.shape_cast %32 : vector<8x16xf32> to vector<1x8x16xf32>
    %37 = vector.shape_cast %33 : vector<8x16xf32> to vector<1x8x16xf32>
    %38 = vector.shape_cast %34 : vector<8x16xf32> to vector<1x8x16xf32>
    %39 = tpu.concatenate %35, %36, %37, %38 in 0 : vector<1x8x16xf32>, vector<1x8x16xf32>, vector<1x8x16xf32>, vector<1x8x16xf32> -> vector<4x8x16xf32>
    %40 = vector.extract_strided_slice %30 {offsets = [0, 32], sizes = [8, 16], strides = [1, 1]} : vector<16x96xf32> to vector<8x16xf32>
    %41 = vector.extract_strided_slice %30 {offsets = [0, 48], sizes = [8, 16], strides = [1, 1]} : vector<16x96xf32> to vector<8x16xf32>
    %42 = vector.extract_strided_slice %30 {offsets = [8, 32], sizes = [8, 16], strides = [1, 1]} : vector<16x96xf32> to vector<8x16xf32>
    %43 = vector.extract_strided_slice %30 {offsets = [8, 48], sizes = [8, 16], strides = [1, 1]} : vector<16x96xf32> to vector<8x16xf32>
    %44 = vector.shape_cast %40 : vector<8x16xf32> to vector<1x8x16xf32>
    %45 = vector.shape_cast %41 : vector<8x16xf32> to vector<1x8x16xf32>
    %46 = vector.shape_cast %42 : vector<8x16xf32> to vector<1x8x16xf32>
    %47 = vector.shape_cast %43 : vector<8x16xf32> to vector<1x8x16xf32>
    %48 = tpu.concatenate %44, %45, %46, %47 in 0 : vector<1x8x16xf32>, vector<1x8x16xf32>, vector<1x8x16xf32>, vector<1x8x16xf32> -> vector<4x8x16xf32>
    %49 = vector.extract_strided_slice %30 {offsets = [0, 64], sizes = [8, 16], strides = [1, 1]} : vector<16x96xf32> to vector<8x16xf32>
    %50 = vector.extract_strided_slice %30 {offsets = [0, 80], sizes = [8, 16], strides = [1, 1]} : vector<16x96xf32> to vector<8x16xf32>
    %51 = vector.extract_strided_slice %30 {offsets = [8, 64], sizes = [8, 16], strides = [1, 1]} : vector<16x96xf32> to vector<8x16xf32>
    %52 = vector.extract_strided_slice %30 {offsets = [8, 80], sizes = [8, 16], strides = [1, 1]} : vector<16x96xf32> to vector<8x16xf32>
    %53 = vector.shape_cast %49 : vector<8x16xf32> to vector<1x8x16xf32>
    %54 = vector.shape_cast %50 : vector<8x16xf32> to vector<1x8x16xf32>
    %55 = vector.shape_cast %51 : vector<8x16xf32> to vector<1x8x16xf32>
    %56 = vector.shape_cast %52 : vector<8x16xf32> to vector<1x8x16xf32>
    %57 = tpu.concatenate %53, %54, %55, %56 in 0 : vector<1x8x16xf32>, vector<1x8x16xf32>, vector<1x8x16xf32>, vector<1x8x16xf32> -> vector<4x8x16xf32>
    "tpu.trace_start"() <{level = 10 : i32, message = "bqd,bkd->bqk"}> : () -> ()
    %cst_17 = arith.constant dense<0.000000e+00> : vector<4x8x8xf32>
    %58 = tpu.matmul %39, %48, %cst_17 {dimension_numbers = #tpu.dot_dimension_numbers<[2], [2], [1], [1], [0, 0, 0, 1, 1, 1], [0], [0]>} : vector<4x8x16xf32>, vector<4x8x16xf32>, vector<4x8x8xf32> -> vector<4x8x8xf32>
    "tpu.trace_stop"() : () -> ()
    %59 = vector.broadcast %23 : vector<4x1x8xf32> to vector<4x8x8xf32>
    %60 = arith.addf %58, %59 : vector<4x8x8xf32>
    %cst_18 = arith.constant dense<0xFF800000> : vector<4x8xf32>
    %61 = vector.multi_reduction <maximumf>, %60, %cst_18 [2] : vector<4x8x8xf32> to vector<4x8xf32>
    %62 = vector.shape_cast %61 : vector<4x8xf32> to vector<4x8x1xf32>
    %63 = vector.broadcast %62 : vector<4x8x1xf32> to vector<4x8x8xf32>
    %64 = arith.subf %60, %63 : vector<4x8x8xf32>
    %65 = math.exp %64 : vector<4x8x8xf32>
    %cst_19 = arith.constant dense<0.000000e+00> : vector<4x8xf32>
    %66 = vector.multi_reduction <add>, %65, %cst_19 [2] : vector<4x8x8xf32> to vector<4x8xf32>
    %67 = vector.shape_cast %66 : vector<4x8xf32> to vector<4x8x1xf32>
    %68 = tpu.reciprocal %67 {approx = true} : vector<4x8x1xf32> -> vector<4x8x1xf32>
    %69 = vector.broadcast %68 : vector<4x8x1xf32> to vector<4x8x8xf32>
    %70 = arith.mulf %65, %69 : vector<4x8x8xf32>
    "tpu.trace_start"() <{level = 10 : i32, message = "bqk,bkd->bqd"}> : () -> ()
    %cst_20 = arith.constant dense<0.000000e+00> : vector<4x8x16xf32>
    %71 = tpu.matmul %70, %57, %cst_20 {dimension_numbers = #tpu.dot_dimension_numbers<[2], [1], [1], [2], [0, 0, 0, 1, 1, 2], [0], [0]>} : vector<4x8x8xf32>, vector<4x8x16xf32>, vector<4x8x16xf32> -> vector<4x8x16xf32>
    "tpu.trace_stop"() : () -> ()
    %72 = vector.extract_strided_slice %71 {offsets = [0, 0, 0], sizes = [1, 8, 16], strides = [1, 1, 1]} : vector<4x8x16xf32> to vector<1x8x16xf32>
    %73 = vector.shape_cast %72 : vector<1x8x16xf32> to vector<8x16xf32>
    %74 = vector.extract_strided_slice %71 {offsets = [1, 0, 0], sizes = [1, 8, 16], strides = [1, 1, 1]} : vector<4x8x16xf32> to vector<1x8x16xf32>
    %75 = vector.shape_cast %74 : vector<1x8x16xf32> to vector<8x16xf32>
    %76 = tpu.concatenate %73, %75 in 1 : vector<8x16xf32>, vector<8x16xf32> -> vector<8x32xf32>
    %77 = vector.extract_strided_slice %71 {offsets = [2, 0, 0], sizes = [1, 8, 16], strides = [1, 1, 1]} : vector<4x8x16xf32> to vector<1x8x16xf32>
    %78 = vector.shape_cast %77 : vector<1x8x16xf32> to vector<8x16xf32>
    %79 = vector.extract_strided_slice %71 {offsets = [3, 0, 0], sizes = [1, 8, 16], strides = [1, 1, 1]} : vector<4x8x16xf32> to vector<1x8x16xf32>
    %80 = vector.shape_cast %79 : vector<1x8x16xf32> to vector<8x16xf32>
    %81 = tpu.concatenate %78, %80 in 1 : vector<8x16xf32>, vector<8x16xf32> -> vector<8x32xf32>
    %82 = tpu.concatenate %76, %81 in 0 : vector<8x32xf32>, vector<8x32xf32> -> vector<16x32xf32>
    %83 = arith.truncf %82 : vector<16x32xf32> to vector<16x32xbf16>
    %c0_21 = arith.constant 0 : index
    %c0_22 = arith.constant 0 : index
    %c0_23 = arith.constant 0 : index
    %84 = vector.load %arg5[%c0_21, %c0_22, %c0_23] : memref<2x32x32xbf16, #tpu.memory_space<vmem>>, vector<1x32x32xbf16>
    %85 = vector.shape_cast %84 : vector<1x32x32xbf16> to vector<32x32xbf16>
    %cst_24 = arith.constant dense<0.000000e+00> : vector<16x32xf32>
    %86 = tpu.matmul %83, %85, %cst_24 {dimension_numbers = #tpu.dot_dimension_numbers<[1], [0], [0], [1], [0, 0, 1, 1], [], []>} : vector<16x32xbf16>, vector<32x32xbf16>, vector<16x32xf32> -> vector<16x32xf32>
    %c0_25 = arith.constant 0 : index
    %c96 = arith.constant 96 : index
    %87 = vector.load %arg9[%c0_25, %c96] : memref<2x352xf32, #tpu.memory_space<vmem>>, vector<1x32xf32>
    %88 = vector.broadcast %87 : vector<1x32xf32> to vector<16x32xf32>
    %89 = arith.addf %86, %88 : vector<16x32xf32>
    %90 = arith.addf %89, %22 : vector<16x32xf32>
    %c0_26 = arith.constant 0 : index
    %c128 = arith.constant 128 : index
    %91 = vector.load %arg9[%c0_26, %c128] : memref<2x352xf32, #tpu.memory_space<vmem>>, vector<1x32xf32>
    %c0_27 = arith.constant 0 : index
    %c160 = arith.constant 160 : index
    %92 = vector.load %arg9[%c0_27, %c160] : memref<2x352xf32, #tpu.memory_space<vmem>>, vector<1x32xf32>
    %cst_28 = arith.constant dense<0.000000e+00> : vector<16xf32>
    %93 = vector.multi_reduction <add>, %90, %cst_28 [1] : vector<16x32xf32> to vector<16xf32>
    %94 = vector.shape_cast %93 : vector<16xf32> to vector<16x1xf32>
    %cst_29 = arith.constant 3.125000e-02 : f32
    %95 = vector.broadcast %cst_29 : f32 to vector<16x1xf32>
    %96 = arith.mulf %94, %95 : vector<16x1xf32>
    %97 = vector.broadcast %96 : vector<16x1xf32> to vector<16x32xf32>
    %98 = arith.subf %90, %97 : vector<16x32xf32>
    %99 = arith.mulf %98, %98 : vector<16x32xf32>
    %cst_30 = arith.constant dense<0.000000e+00> : vector<16xf32>
    %100 = vector.multi_reduction <add>, %99, %cst_30 [1] : vector<16x32xf32> to vector<16xf32>
    %101 = vector.shape_cast %100 : vector<16xf32> to vector<16x1xf32>
    %cst_31 = arith.constant 3.125000e-02 : f32
    %102 = vector.broadcast %cst_31 : f32 to vector<16x1xf32>
    %103 = arith.mulf %101, %102 : vector<16x1xf32>
    %cst_32 = arith.constant 9.99999974E-6 : f32
    %104 = vector.broadcast %cst_32 : f32 to vector<16x1xf32>
    %105 = arith.addf %103, %104 : vector<16x1xf32>
    %106 = math.rsqrt %105 : vector<16x1xf32>
    %107 = vector.broadcast %106 : vector<16x1xf32> to vector<16x32xf32>
    %108 = arith.mulf %98, %107 : vector<16x32xf32>
    %109 = vector.broadcast %91 : vector<1x32xf32> to vector<16x32xf32>
    %110 = arith.mulf %108, %109 : vector<16x32xf32>
    %111 = vector.broadcast %92 : vector<1x32xf32> to vector<16x32xf32>
    %112 = arith.addf %110, %111 : vector<16x32xf32>
    %113 = arith.truncf %112 : vector<16x32xf32> to vector<16x32xbf16>
    %c0_33 = arith.constant 0 : index
    %c0_34 = arith.constant 0 : index
    %c0_35 = arith.constant 0 : index
    %114 = vector.load %arg6[%c0_33, %c0_34, %c0_35] : memref<2x32x64xbf16, #tpu.memory_space<vmem>>, vector<1x32x64xbf16>
    %115 = vector.shape_cast %114 : vector<1x32x64xbf16> to vector<32x64xbf16>
    %cst_36 = arith.constant dense<0.000000e+00> : vector<16x64xf32>
    %116 = tpu.matmul %113, %115, %cst_36 {dimension_numbers = #tpu.dot_dimension_numbers<[1], [0], [0], [1], [0, 0, 1, 1], [], []>} : vector<16x32xbf16>, vector<32x64xbf16>, vector<16x64xf32> -> vector<16x64xf32>
    %c0_37 = arith.constant 0 : index
    %c192 = arith.constant 192 : index
    %117 = vector.load %arg9[%c0_37, %c192] : memref<2x352xf32, #tpu.memory_space<vmem>>, vector<1x64xf32>
    %118 = vector.broadcast %117 : vector<1x64xf32> to vector<16x64xf32>
    %119 = arith.addf %116, %118 : vector<16x64xf32>
    %120 = arith.mulf %119, %119 : vector<16x64xf32>
    %121 = arith.mulf %119, %120 : vector<16x64xf32>
    %cst_38 = arith.constant 4.471500e-02 : f32
    %122 = vector.broadcast %cst_38 : f32 to vector<16x64xf32>
    %123 = arith.mulf %122, %121 : vector<16x64xf32>
    %124 = arith.addf %119, %123 : vector<16x64xf32>
    %cst_39 = arith.constant 0.797884583 : f32
    %125 = vector.broadcast %cst_39 : f32 to vector<16x64xf32>
    %126 = arith.mulf %125, %124 : vector<16x64xf32>
    %127 = math.tanh %126 : vector<16x64xf32>
    %cst_40 = arith.constant 1.000000e+00 : f32
    %128 = vector.broadcast %cst_40 : f32 to vector<16x64xf32>
    %129 = arith.addf %128, %127 : vector<16x64xf32>
    %cst_41 = arith.constant 5.000000e-01 : f32
    %130 = vector.broadcast %cst_41 : f32 to vector<16x64xf32>
    %131 = arith.mulf %130, %129 : vector<16x64xf32>
    %132 = arith.mulf %119, %131 : vector<16x64xf32>
    %133 = arith.truncf %132 : vector<16x64xf32> to vector<16x64xbf16>
    %c0_42 = arith.constant 0 : index
    %c0_43 = arith.constant 0 : index
    %c0_44 = arith.constant 0 : index
    %134 = vector.load %arg7[%c0_42, %c0_43, %c0_44] : memref<2x64x32xbf16, #tpu.memory_space<vmem>>, vector<1x64x32xbf16>
    %135 = vector.shape_cast %134 : vector<1x64x32xbf16> to vector<64x32xbf16>
    %cst_45 = arith.constant dense<0.000000e+00> : vector<16x32xf32>
    %136 = tpu.matmul %133, %135, %cst_45 {dimension_numbers = #tpu.dot_dimension_numbers<[1], [0], [0], [1], [0, 0, 1, 1], [], []>} : vector<16x64xbf16>, vector<64x32xbf16>, vector<16x32xf32> -> vector<16x32xf32>
    %c0_46 = arith.constant 0 : index
    %c256 = arith.constant 256 : index
    %137 = vector.load %arg9[%c0_46, %c256] : memref<2x352xf32, #tpu.memory_space<vmem>>, vector<1x32xf32>
    %138 = vector.broadcast %137 : vector<1x32xf32> to vector<16x32xf32>
    %139 = arith.addf %136, %138 : vector<16x32xf32>
    %140 = arith.addf %139, %112 : vector<16x32xf32>
    %c0_47 = arith.constant 0 : index
    %c288 = arith.constant 288 : index
    %141 = vector.load %arg9[%c0_47, %c288] : memref<2x352xf32, #tpu.memory_space<vmem>>, vector<1x32xf32>
    %c0_48 = arith.constant 0 : index
    %c320 = arith.constant 320 : index
    %142 = vector.load %arg9[%c0_48, %c320] : memref<2x352xf32, #tpu.memory_space<vmem>>, vector<1x32xf32>
    %cst_49 = arith.constant dense<0.000000e+00> : vector<16xf32>
    %143 = vector.multi_reduction <add>, %140, %cst_49 [1] : vector<16x32xf32> to vector<16xf32>
    %144 = vector.shape_cast %143 : vector<16xf32> to vector<16x1xf32>
    %cst_50 = arith.constant 3.125000e-02 : f32
    %145 = vector.broadcast %cst_50 : f32 to vector<16x1xf32>
    %146 = arith.mulf %144, %145 : vector<16x1xf32>
    %147 = vector.broadcast %146 : vector<16x1xf32> to vector<16x32xf32>
    %148 = arith.subf %140, %147 : vector<16x32xf32>
    %149 = arith.mulf %148, %148 : vector<16x32xf32>
    %cst_51 = arith.constant dense<0.000000e+00> : vector<16xf32>
    %150 = vector.multi_reduction <add>, %149, %cst_51 [1] : vector<16x32xf32> to vector<16xf32>
    %151 = vector.shape_cast %150 : vector<16xf32> to vector<16x1xf32>
    %cst_52 = arith.constant 3.125000e-02 : f32
    %152 = vector.broadcast %cst_52 : f32 to vector<16x1xf32>
    %153 = arith.mulf %151, %152 : vector<16x1xf32>
    %cst_53 = arith.constant 9.99999974E-6 : f32
    %154 = vector.broadcast %cst_53 : f32 to vector<16x1xf32>
    %155 = arith.addf %153, %154 : vector<16x1xf32>
    %156 = math.rsqrt %155 : vector<16x1xf32>
    %157 = vector.broadcast %156 : vector<16x1xf32> to vector<16x32xf32>
    %158 = arith.mulf %148, %157 : vector<16x32xf32>
    %159 = vector.broadcast %141 : vector<1x32xf32> to vector<16x32xf32>
    %160 = arith.mulf %158, %159 : vector<16x32xf32>
    %161 = vector.broadcast %142 : vector<1x32xf32> to vector<16x32xf32>
    %162 = arith.addf %160, %161 : vector<16x32xf32>
    %163 = arith.truncf %162 : vector<16x32xf32> to vector<16x32xbf16>
    %c1 = arith.constant 1 : index
    %c0_54 = arith.constant 0 : index
    %c0_55 = arith.constant 0 : index
    %164 = vector.load %arg4[%c1, %c0_54, %c0_55] : memref<2x32x96xbf16, #tpu.memory_space<vmem>>, vector<1x32x96xbf16>
    %165 = vector.shape_cast %164 : vector<1x32x96xbf16> to vector<32x96xbf16>
    %cst_56 = arith.constant dense<0.000000e+00> : vector<16x96xf32>
    %166 = tpu.matmul %163, %165, %cst_56 {dimension_numbers = #tpu.dot_dimension_numbers<[1], [0], [0], [1], [0, 0, 1, 1], [], []>} : vector<16x32xbf16>, vector<32x96xbf16>, vector<16x96xf32> -> vector<16x96xf32>
    %c1_57 = arith.constant 1 : index
    %c0_58 = arith.constant 0 : index
    %167 = vector.load %arg9[%c1_57, %c0_58] : memref<2x352xf32, #tpu.memory_space<vmem>>, vector<1x96xf32>
    %168 = vector.broadcast %167 : vector<1x96xf32> to vector<16x96xf32>
    %169 = arith.addf %166, %168 : vector<16x96xf32>
    %170 = vector.extract_strided_slice %169 {offsets = [0, 0], sizes = [8, 16], strides = [1, 1]} : vector<16x96xf32> to vector<8x16xf32>
    %171 = vector.extract_strided_slice %169 {offsets = [0, 16], sizes = [8, 16], strides = [1, 1]} : vector<16x96xf32> to vector<8x16xf32>
    %172 = vector.extract_strided_slice %169 {offsets = [8, 0], sizes = [8, 16], strides = [1, 1]} : vector<16x96xf32> to vector<8x16xf32>
    %173 = vector.extract_strided_slice %169 {offsets = [8, 16], sizes = [8, 16], strides = [1, 1]} : vector<16x96xf32> to vector<8x16xf32>
    %174 = vector.shape_cast %170 : vector<8x16xf32> to vector<1x8x16xf32>
    %175 = vector.shape_cast %171 : vector<8x16xf32> to vector<1x8x16xf32>
    %176 = vector.shape_cast %172 : vector<8x16xf32> to vector<1x8x16xf32>
    %177 = vector.shape_cast %173 : vector<8x16xf32> to vector<1x8x16xf32>
    %178 = tpu.concatenate %174, %175, %176, %177 in 0 : vector<1x8x16xf32>, vector<1x8x16xf32>, vector<1x8x16xf32>, vector<1x8x16xf32> -> vector<4x8x16xf32>
    %179 = vector.extract_strided_slice %169 {offsets = [0, 32], sizes = [8, 16], strides = [1, 1]} : vector<16x96xf32> to vector<8x16xf32>
    %180 = vector.extract_strided_slice %169 {offsets = [0, 48], sizes = [8, 16], strides = [1, 1]} : vector<16x96xf32> to vector<8x16xf32>
    %181 = vector.extract_strided_slice %169 {offsets = [8, 32], sizes = [8, 16], strides = [1, 1]} : vector<16x96xf32> to vector<8x16xf32>
    %182 = vector.extract_strided_slice %169 {offsets = [8, 48], sizes = [8, 16], strides = [1, 1]} : vector<16x96xf32> to vector<8x16xf32>
    %183 = vector.shape_cast %179 : vector<8x16xf32> to vector<1x8x16xf32>
    %184 = vector.shape_cast %180 : vector<8x16xf32> to vector<1x8x16xf32>
    %185 = vector.shape_cast %181 : vector<8x16xf32> to vector<1x8x16xf32>
    %186 = vector.shape_cast %182 : vector<8x16xf32> to vector<1x8x16xf32>
    %187 = tpu.concatenate %183, %184, %185, %186 in 0 : vector<1x8x16xf32>, vector<1x8x16xf32>, vector<1x8x16xf32>, vector<1x8x16xf32> -> vector<4x8x16xf32>
    %188 = vector.extract_strided_slice %169 {offsets = [0, 64], sizes = [8, 16], strides = [1, 1]} : vector<16x96xf32> to vector<8x16xf32>
    %189 = vector.extract_strided_slice %169 {offsets = [0, 80], sizes = [8, 16], strides = [1, 1]} : vector<16x96xf32> to vector<8x16xf32>
    %190 = vector.extract_strided_slice %169 {offsets = [8, 64], sizes = [8, 16], strides = [1, 1]} : vector<16x96xf32> to vector<8x16xf32>
    %191 = vector.extract_strided_slice %169 {offsets = [8, 80], sizes = [8, 16], strides = [1, 1]} : vector<16x96xf32> to vector<8x16xf32>
    %192 = vector.shape_cast %188 : vector<8x16xf32> to vector<1x8x16xf32>
    %193 = vector.shape_cast %189 : vector<8x16xf32> to vector<1x8x16xf32>
    %194 = vector.shape_cast %190 : vector<8x16xf32> to vector<1x8x16xf32>
    %195 = vector.shape_cast %191 : vector<8x16xf32> to vector<1x8x16xf32>
    %196 = tpu.concatenate %192, %193, %194, %195 in 0 : vector<1x8x16xf32>, vector<1x8x16xf32>, vector<1x8x16xf32>, vector<1x8x16xf32> -> vector<4x8x16xf32>
    "tpu.trace_start"() <{level = 10 : i32, message = "bqd,bkd->bqk"}> : () -> ()
    %cst_59 = arith.constant dense<0.000000e+00> : vector<4x8x8xf32>
    %197 = tpu.matmul %178, %187, %cst_59 {dimension_numbers = #tpu.dot_dimension_numbers<[2], [2], [1], [1], [0, 0, 0, 1, 1, 1], [0], [0]>} : vector<4x8x16xf32>, vector<4x8x16xf32>, vector<4x8x8xf32> -> vector<4x8x8xf32>
    "tpu.trace_stop"() : () -> ()
    %198 = vector.broadcast %23 : vector<4x1x8xf32> to vector<4x8x8xf32>
    %199 = arith.addf %197, %198 : vector<4x8x8xf32>
    %cst_60 = arith.constant dense<0xFF800000> : vector<4x8xf32>
    %200 = vector.multi_reduction <maximumf>, %199, %cst_60 [2] : vector<4x8x8xf32> to vector<4x8xf32>
    %201 = vector.shape_cast %200 : vector<4x8xf32> to vector<4x8x1xf32>
    %202 = vector.broadcast %201 : vector<4x8x1xf32> to vector<4x8x8xf32>
    %203 = arith.subf %199, %202 : vector<4x8x8xf32>
    %204 = math.exp %203 : vector<4x8x8xf32>
    %cst_61 = arith.constant dense<0.000000e+00> : vector<4x8xf32>
    %205 = vector.multi_reduction <add>, %204, %cst_61 [2] : vector<4x8x8xf32> to vector<4x8xf32>
    %206 = vector.shape_cast %205 : vector<4x8xf32> to vector<4x8x1xf32>
    %207 = tpu.reciprocal %206 {approx = true} : vector<4x8x1xf32> -> vector<4x8x1xf32>
    %208 = vector.broadcast %207 : vector<4x8x1xf32> to vector<4x8x8xf32>
    %209 = arith.mulf %204, %208 : vector<4x8x8xf32>
    "tpu.trace_start"() <{level = 10 : i32, message = "bqk,bkd->bqd"}> : () -> ()
    %cst_62 = arith.constant dense<0.000000e+00> : vector<4x8x16xf32>
    %210 = tpu.matmul %209, %196, %cst_62 {dimension_numbers = #tpu.dot_dimension_numbers<[2], [1], [1], [2], [0, 0, 0, 1, 1, 2], [0], [0]>} : vector<4x8x8xf32>, vector<4x8x16xf32>, vector<4x8x16xf32> -> vector<4x8x16xf32>
    "tpu.trace_stop"() : () -> ()
    %211 = vector.extract_strided_slice %210 {offsets = [0, 0, 0], sizes = [1, 8, 16], strides = [1, 1, 1]} : vector<4x8x16xf32> to vector<1x8x16xf32>
    %212 = vector.shape_cast %211 : vector<1x8x16xf32> to vector<8x16xf32>
    %213 = vector.extract_strided_slice %210 {offsets = [1, 0, 0], sizes = [1, 8, 16], strides = [1, 1, 1]} : vector<4x8x16xf32> to vector<1x8x16xf32>
    %214 = vector.shape_cast %213 : vector<1x8x16xf32> to vector<8x16xf32>
    %215 = tpu.concatenate %212, %214 in 1 : vector<8x16xf32>, vector<8x16xf32> -> vector<8x32xf32>
    %216 = vector.extract_strided_slice %210 {offsets = [2, 0, 0], sizes = [1, 8, 16], strides = [1, 1, 1]} : vector<4x8x16xf32> to vector<1x8x16xf32>
    %217 = vector.shape_cast %216 : vector<1x8x16xf32> to vector<8x16xf32>
    %218 = vector.extract_strided_slice %210 {offsets = [3, 0, 0], sizes = [1, 8, 16], strides = [1, 1, 1]} : vector<4x8x16xf32> to vector<1x8x16xf32>
    %219 = vector.shape_cast %218 : vector<1x8x16xf32> to vector<8x16xf32>
    %220 = tpu.concatenate %217, %219 in 1 : vector<8x16xf32>, vector<8x16xf32> -> vector<8x32xf32>
    %221 = tpu.concatenate %215, %220 in 0 : vector<8x32xf32>, vector<8x32xf32> -> vector<16x32xf32>
    %222 = arith.truncf %221 : vector<16x32xf32> to vector<16x32xbf16>
    %c1_63 = arith.constant 1 : index
    %c0_64 = arith.constant 0 : index
    %c0_65 = arith.constant 0 : index
    %223 = vector.load %arg5[%c1_63, %c0_64, %c0_65] : memref<2x32x32xbf16, #tpu.memory_space<vmem>>, vector<1x32x32xbf16>
    %224 = vector.shape_cast %223 : vector<1x32x32xbf16> to vector<32x32xbf16>
    %cst_66 = arith.constant dense<0.000000e+00> : vector<16x32xf32>
    %225 = tpu.matmul %222, %224, %cst_66 {dimension_numbers = #tpu.dot_dimension_numbers<[1], [0], [0], [1], [0, 0, 1, 1], [], []>} : vector<16x32xbf16>, vector<32x32xbf16>, vector<16x32xf32> -> vector<16x32xf32>
    %c1_67 = arith.constant 1 : index
    %c96_68 = arith.constant 96 : index
    %226 = vector.load %arg9[%c1_67, %c96_68] : memref<2x352xf32, #tpu.memory_space<vmem>>, vector<1x32xf32>
    %227 = vector.broadcast %226 : vector<1x32xf32> to vector<16x32xf32>
    %228 = arith.addf %225, %227 : vector<16x32xf32>
    %229 = arith.addf %228, %162 : vector<16x32xf32>
    %c1_69 = arith.constant 1 : index
    %c128_70 = arith.constant 128 : index
    %230 = vector.load %arg9[%c1_69, %c128_70] : memref<2x352xf32, #tpu.memory_space<vmem>>, vector<1x32xf32>
    %c1_71 = arith.constant 1 : index
    %c160_72 = arith.constant 160 : index
    %231 = vector.load %arg9[%c1_71, %c160_72] : memref<2x352xf32, #tpu.memory_space<vmem>>, vector<1x32xf32>
    %cst_73 = arith.constant dense<0.000000e+00> : vector<16xf32>
    %232 = vector.multi_reduction <add>, %229, %cst_73 [1] : vector<16x32xf32> to vector<16xf32>
    %233 = vector.shape_cast %232 : vector<16xf32> to vector<16x1xf32>
    %cst_74 = arith.constant 3.125000e-02 : f32
    %234 = vector.broadcast %cst_74 : f32 to vector<16x1xf32>
    %235 = arith.mulf %233, %234 : vector<16x1xf32>
    %236 = vector.broadcast %235 : vector<16x1xf32> to vector<16x32xf32>
    %237 = arith.subf %229, %236 : vector<16x32xf32>
    %238 = arith.mulf %237, %237 : vector<16x32xf32>
    %cst_75 = arith.constant dense<0.000000e+00> : vector<16xf32>
    %239 = vector.multi_reduction <add>, %238, %cst_75 [1] : vector<16x32xf32> to vector<16xf32>
    %240 = vector.shape_cast %239 : vector<16xf32> to vector<16x1xf32>
    %cst_76 = arith.constant 3.125000e-02 : f32
    %241 = vector.broadcast %cst_76 : f32 to vector<16x1xf32>
    %242 = arith.mulf %240, %241 : vector<16x1xf32>
    %cst_77 = arith.constant 9.99999974E-6 : f32
    %243 = vector.broadcast %cst_77 : f32 to vector<16x1xf32>
    %244 = arith.addf %242, %243 : vector<16x1xf32>
    %245 = math.rsqrt %244 : vector<16x1xf32>
    %246 = vector.broadcast %245 : vector<16x1xf32> to vector<16x32xf32>
    %247 = arith.mulf %237, %246 : vector<16x32xf32>
    %248 = vector.broadcast %230 : vector<1x32xf32> to vector<16x32xf32>
    %249 = arith.mulf %247, %248 : vector<16x32xf32>
    %250 = vector.broadcast %231 : vector<1x32xf32> to vector<16x32xf32>
    %251 = arith.addf %249, %250 : vector<16x32xf32>
    %252 = arith.truncf %251 : vector<16x32xf32> to vector<16x32xbf16>
    %c1_78 = arith.constant 1 : index
    %c0_79 = arith.constant 0 : index
    %c0_80 = arith.constant 0 : index
    %253 = vector.load %arg6[%c1_78, %c0_79, %c0_80] : memref<2x32x64xbf16, #tpu.memory_space<vmem>>, vector<1x32x64xbf16>
    %254 = vector.shape_cast %253 : vector<1x32x64xbf16> to vector<32x64xbf16>
    %cst_81 = arith.constant dense<0.000000e+00> : vector<16x64xf32>
    %255 = tpu.matmul %252, %254, %cst_81 {dimension_numbers = #tpu.dot_dimension_numbers<[1], [0], [0], [1], [0, 0, 1, 1], [], []>} : vector<16x32xbf16>, vector<32x64xbf16>, vector<16x64xf32> -> vector<16x64xf32>
    %c1_82 = arith.constant 1 : index
    %c192_83 = arith.constant 192 : index
    %256 = vector.load %arg9[%c1_82, %c192_83] : memref<2x352xf32, #tpu.memory_space<vmem>>, vector<1x64xf32>
    %257 = vector.broadcast %256 : vector<1x64xf32> to vector<16x64xf32>
    %258 = arith.addf %255, %257 : vector<16x64xf32>
    %259 = arith.mulf %258, %258 : vector<16x64xf32>
    %260 = arith.mulf %258, %259 : vector<16x64xf32>
    %cst_84 = arith.constant 4.471500e-02 : f32
    %261 = vector.broadcast %cst_84 : f32 to vector<16x64xf32>
    %262 = arith.mulf %261, %260 : vector<16x64xf32>
    %263 = arith.addf %258, %262 : vector<16x64xf32>
    %cst_85 = arith.constant 0.797884583 : f32
    %264 = vector.broadcast %cst_85 : f32 to vector<16x64xf32>
    %265 = arith.mulf %264, %263 : vector<16x64xf32>
    %266 = math.tanh %265 : vector<16x64xf32>
    %cst_86 = arith.constant 1.000000e+00 : f32
    %267 = vector.broadcast %cst_86 : f32 to vector<16x64xf32>
    %268 = arith.addf %267, %266 : vector<16x64xf32>
    %cst_87 = arith.constant 5.000000e-01 : f32
    %269 = vector.broadcast %cst_87 : f32 to vector<16x64xf32>
    %270 = arith.mulf %269, %268 : vector<16x64xf32>
    %271 = arith.mulf %258, %270 : vector<16x64xf32>
    %272 = arith.truncf %271 : vector<16x64xf32> to vector<16x64xbf16>
    %c1_88 = arith.constant 1 : index
    %c0_89 = arith.constant 0 : index
    %c0_90 = arith.constant 0 : index
    %273 = vector.load %arg7[%c1_88, %c0_89, %c0_90] : memref<2x64x32xbf16, #tpu.memory_space<vmem>>, vector<1x64x32xbf16>
    %274 = vector.shape_cast %273 : vector<1x64x32xbf16> to vector<64x32xbf16>
    %cst_91 = arith.constant dense<0.000000e+00> : vector<16x32xf32>
    %275 = tpu.matmul %272, %274, %cst_91 {dimension_numbers = #tpu.dot_dimension_numbers<[1], [0], [0], [1], [0, 0, 1, 1], [], []>} : vector<16x64xbf16>, vector<64x32xbf16>, vector<16x32xf32> -> vector<16x32xf32>
    %c1_92 = arith.constant 1 : index
    %c256_93 = arith.constant 256 : index
    %276 = vector.load %arg9[%c1_92, %c256_93] : memref<2x352xf32, #tpu.memory_space<vmem>>, vector<1x32xf32>
    %277 = vector.broadcast %276 : vector<1x32xf32> to vector<16x32xf32>
    %278 = arith.addf %275, %277 : vector<16x32xf32>
    %279 = arith.addf %278, %251 : vector<16x32xf32>
    %c1_94 = arith.constant 1 : index
    %c288_95 = arith.constant 288 : index
    %280 = vector.load %arg9[%c1_94, %c288_95] : memref<2x352xf32, #tpu.memory_space<vmem>>, vector<1x32xf32>
    %c1_96 = arith.constant 1 : index
    %c320_97 = arith.constant 320 : index
    %281 = vector.load %arg9[%c1_96, %c320_97] : memref<2x352xf32, #tpu.memory_space<vmem>>, vector<1x32xf32>
    %cst_98 = arith.constant dense<0.000000e+00> : vector<16xf32>
    %282 = vector.multi_reduction <add>, %279, %cst_98 [1] : vector<16x32xf32> to vector<16xf32>
    %283 = vector.shape_cast %282 : vector<16xf32> to vector<16x1xf32>
    %cst_99 = arith.constant 3.125000e-02 : f32
    %284 = vector.broadcast %cst_99 : f32 to vector<16x1xf32>
    %285 = arith.mulf %283, %284 : vector<16x1xf32>
    %286 = vector.broadcast %285 : vector<16x1xf32> to vector<16x32xf32>
    %287 = arith.subf %279, %286 : vector<16x32xf32>
    %288 = arith.mulf %287, %287 : vector<16x32xf32>
    %cst_100 = arith.constant dense<0.000000e+00> : vector<16xf32>
    %289 = vector.multi_reduction <add>, %288, %cst_100 [1] : vector<16x32xf32> to vector<16xf32>
    %290 = vector.shape_cast %289 : vector<16xf32> to vector<16x1xf32>
    %cst_101 = arith.constant 3.125000e-02 : f32
    %291 = vector.broadcast %cst_101 : f32 to vector<16x1xf32>
    %292 = arith.mulf %290, %291 : vector<16x1xf32>
    %cst_102 = arith.constant 9.99999974E-6 : f32
    %293 = vector.broadcast %cst_102 : f32 to vector<16x1xf32>
    %294 = arith.addf %292, %293 : vector<16x1xf32>
    %295 = math.rsqrt %294 : vector<16x1xf32>
    %296 = vector.broadcast %295 : vector<16x1xf32> to vector<16x32xf32>
    %297 = arith.mulf %287, %296 : vector<16x32xf32>
    %298 = vector.broadcast %280 : vector<1x32xf32> to vector<16x32xf32>
    %299 = arith.mulf %297, %298 : vector<16x32xf32>
    %300 = vector.broadcast %281 : vector<1x32xf32> to vector<16x32xf32>
    %301 = arith.addf %299, %300 : vector<16x32xf32>
    %302 = vector.extract_strided_slice %301 {offsets = [0, 0], sizes = [1, 32], strides = [1, 1]} : vector<16x32xf32> to vector<1x32xf32>
    %303 = vector.extract_strided_slice %301 {offsets = [8, 0], sizes = [1, 32], strides = [1, 1]} : vector<16x32xf32> to vector<1x32xf32>
    %304 = tpu.concatenate %302, %303 in 0 : vector<1x32xf32>, vector<1x32xf32> -> vector<2x32xf32>
    %305 = arith.truncf %304 : vector<2x32xf32> to vector<2x32xbf16>
    %c0_103 = arith.constant 0 : index
    %c0_104 = arith.constant 0 : index
    %306 = vector.load %arg8[%c0_103, %c0_104] : memref<32x35xbf16, #tpu.memory_space<vmem>>, vector<32x32xbf16>
    %cst_105 = arith.constant dense<0.000000e+00> : vector<2x32xf32>
    %307 = tpu.matmul %305, %306, %cst_105 {dimension_numbers = #tpu.dot_dimension_numbers<[1], [0], [0], [1], [0, 0, 1, 1], [], []>} : vector<2x32xbf16>, vector<32x32xbf16>, vector<2x32xf32> -> vector<2x32xf32>
    %c0_106 = arith.constant 0 : index
    %c64 = arith.constant 64 : index
    %308 = vector.load %arg10[%c0_106, %c64] : memref<1x99xf32, #tpu.memory_space<vmem>>, vector<1x32xf32>
    %309 = vector.broadcast %308 : vector<1x32xf32> to vector<2x32xf32>
    %310 = arith.addf %307, %309 : vector<2x32xf32>
    %311 = math.tanh %310 : vector<2x32xf32>
    %312 = arith.truncf %311 : vector<2x32xf32> to vector<2x32xbf16>
    %c0_107 = arith.constant 0 : index
    %c32_108 = arith.constant 32 : index
    %313 = vector.load %arg8[%c0_107, %c32_108] : memref<32x35xbf16, #tpu.memory_space<vmem>>, vector<32x3xbf16>
    %cst_109 = arith.constant dense<0.000000e+00> : vector<2x3xf32>
    %314 = tpu.matmul %312, %313, %cst_109 {dimension_numbers = #tpu.dot_dimension_numbers<[1], [0], [0], [1], [0, 0, 1, 1], [], []>} : vector<2x32xbf16>, vector<32x3xbf16>, vector<2x3xf32> -> vector<2x3xf32>
    %c0_110 = arith.constant 0 : index
    %c96_111 = arith.constant 96 : index
    %315 = vector.load %arg10[%c0_110, %c96_111] : memref<1x99xf32, #tpu.memory_space<vmem>>, vector<1x3xf32>
    %316 = vector.broadcast %315 : vector<1x3xf32> to vector<2x3xf32>
    %317 = arith.addf %314, %316 : vector<2x3xf32>
    %c0_112 = arith.constant 0 : index
    %c0_113 = arith.constant 0 : index
    %318 = vector.load %arg11[%c0_112, %c0_113] : memref<2x3xf32, #tpu.memory_space<vmem>>, vector<2x3xf32>
    tpu.vector_store %arg11[%c0_112, %c0_113], %317 {strides = array<i32>} : memref<2x3xf32, #tpu.memory_space<vmem>>, vector<2x3xf32>,
    %cst_114 = arith.constant dense<0xFF800000> : vector<2xf32>
    %319 = vector.multi_reduction <maximumf>, %317, %cst_114 [1] : vector<2x3xf32> to vector<2xf32>
    %320 = vector.shape_cast %319 : vector<2xf32> to vector<2x1xf32>
    %321 = vector.broadcast %320 : vector<2x1xf32> to vector<2x3xf32>
    %322 = arith.subf %317, %321 : vector<2x3xf32>
    %323 = math.exp %322 : vector<2x3xf32>
    %cst_115 = arith.constant dense<0.000000e+00> : vector<2xf32>
    %324 = vector.multi_reduction <add>, %323, %cst_115 [1] : vector<2x3xf32> to vector<2xf32>
    %325 = vector.shape_cast %324 : vector<2xf32> to vector<2x1xf32>
    %326 = math.log %325 : vector<2x1xf32>
    %327 = arith.addf %326, %320 : vector<2x1xf32>
    %c0_116 = arith.constant 0 : index
    %c0_117 = arith.constant 0 : index
    %328 = vector.load %arg3[%c0_116, %c0_117] : memref<2x3xf32, #tpu.memory_space<vmem>>, vector<2x3xf32>
    %329 = vector.broadcast %327 : vector<2x1xf32> to vector<2x3xf32>
    %330 = arith.subf %317, %329 : vector<2x3xf32>
    %331 = arith.mulf %328, %330 : vector<2x3xf32>
    %cst_118 = arith.constant dense<0.000000e+00> : vector<2xf32>
    %332 = vector.multi_reduction <add>, %331, %cst_118 [1] : vector<2x3xf32> to vector<2xf32>
    %333 = vector.shape_cast %332 : vector<2xf32> to vector<2x1xf32>
    %cst_119 = arith.constant 0.000000e+00 : f32
    %334 = vector.broadcast %cst_119 : f32 to vector<2x1xf32>
    %335 = arith.subf %334, %333 : vector<2x1xf32>
    %cst_120 = arith.constant dense<0.000000e+00> : vector<1xf32>
    %336 = vector.multi_reduction <add>, %335, %cst_120 [0] : vector<2x1xf32> to vector<1xf32>
    %337 = vector.shape_cast %336 : vector<1xf32> to vector<1x1xf32>
    %cst_121 = arith.constant 5.000000e-01 : f32
    %338 = vector.broadcast %cst_121 : f32 to vector<1x1xf32>
    %339 = arith.mulf %337, %338 : vector<1x1xf32>
    %c0_122 = arith.constant 0 : index
    %c0_123 = arith.constant 0 : index
    %340 = vector.load %arg12[%c0_122, %c0_123] : memref<1x1xf32, #tpu.memory_space<vmem>>, vector<1x1xf32>
    tpu.vector_store %arg12[%c0_122, %c0_123], %339 {strides = array<i32>} : memref<1x1xf32, #tpu.memory_space<vmem>>, vector<1x1xf32>,
    return
  }
  func.func @transform_0(%arg0: i32) -> (i32, i32) {
    %c0_i32 = arith.constant 0 : i32
    %c0_i32_0 = arith.constant 0 : i32
    %c0_i32_1 = arith.constant 0 : i32
    return %c0_i32, %c0_i32_0 : i32, i32
  }
  func.func @transform_1(%arg0: i32) -> (i32, i32, i32) {
    %c0_i32 = arith.constant 0 : i32
    %c0_i32_0 = arith.constant 0 : i32
    %c0_i32_1 = arith.constant 0 : i32
    %c0_i32_2 = arith.constant 0 : i32
    return %c0_i32, %c0_i32_0, %c0_i32_1 : i32, i32, i32
  }
  func.func @transform_2(%arg0: i32) -> (i32, i32) {
    %c0_i32 = arith.constant 0 : i32
    %c0_i32_0 = arith.constant 0 : i32
    %c0_i32_1 = arith.constant 0 : i32
    return %c0_i32, %c0_i32_0 : i32, i32
  }
  func.func @transform_3(%arg0: i32) -> (i32, i32, i32) {
    %c0_i32 = arith.constant 0 : i32
    %c0_i32_0 = arith.constant 0 : i32
    %c0_i32_1 = arith.constant 0 : i32
    %c0_i32_2 = arith.constant 0 : i32
    return %c0_i32, %c0_i32_0, %c0_i32_1 : i32, i32, i32
  }
  func.func @transform_4(%arg0: i32) -> (i32, i32, i32) {
    %c0_i32 = arith.constant 0 : i32
    %c0_i32_0 = arith.constant 0 : i32
    %c0_i32_1 = arith.constant 0 : i32
    %c0_i32_2 = arith.constant 0 : i32
    return %c0_i32, %c0_i32_0, %c0_i32_1 : i32, i32, i32
  }
  func.func @transform_5(%arg0: i32) -> (i32, i32, i32) {
    %c0_i32 = arith.constant 0 : i32
    %c0_i32_0 = arith.constant 0 : i32
    %c0_i32_1 = arith.constant 0 : i32
    %c0_i32_2 = arith.constant 0 : i32
    return %c0_i32, %c0_i32_0, %c0_i32_1 : i32, i32, i32
  }
  func.func @transform_6(%arg0: i32) -> (i32, i32, i32) {
    %c0_i32 = arith.constant 0 : i32
    %c0_i32_0 = arith.constant 0 : i32
    %c0_i32_1 = arith.constant 0 : i32
    %c0_i32_2 = arith.constant 0 : i32
    return %c0_i32, %c0_i32_0, %c0_i32_1 : i32, i32, i32
  }
  func.func @transform_7(%arg0: i32) -> (i32, i32) {
    %c0_i32 = arith.constant 0 : i32
    %c0_i32_0 = arith.constant 0 : i32
    %c0_i32_1 = arith.constant 0 : i32
    return %c0_i32, %c0_i32_0 : i32, i32
  }
  func.func @transform_8(%arg0: i32) -> (i32, i32) {
    %c0_i32 = arith.constant 0 : i32
    %c0_i32_0 = arith.constant 0 : i32
    %c0_i32_1 = arith.constant 0 : i32
    return %c0_i32, %c0_i32_0 : i32, i32
  }
  func.func @transform_9(%arg0: i32) -> (i32, i32) {
    %c0_i32 = arith.constant 0 : i32
    %c0_i32_0 = arith.constant 0 : i32
    %c0_i32_1 = arith.constant 0 : i32
    return %c0_i32, %c0_i32_0 : i32, i32
  }
  func.func @transform_10(%arg0: i32) -> (i32, i32) {
    %c0_i32 = arith.constant 0 : i32
    %c0_i32_0 = arith.constant 0 : i32
    %c0_i32_1 = arith.constant 0 : i32
    return %c0_i32, %c0_i32_0 : i32, i32
  }
  func.func @transform_11(%arg0: i32) -> (i32, i32) {
    %c0_i32 = arith.constant 0 : i32
    %c0_i32_0 = arith.constant 0 : i32
    %c0_i32_1 = arith.constant 0 : i32
    return %c0_i32, %c0_i32_0 : i32, i32
  }
}

</mosaic_0001>

<bundles_post_ra>
// kernel: roberta_forward.1
= control target key start
LH: loop header
LB: loop body
LE: loop exit
PB: predicated region body
PF: predicated region fallthrough
CT: control target
= control target key end

     0   :  { %17 = vsyncpa [#allocation3], 0  ;;  %vm43_vm0 = vcmask 261120   ;;  %s3346_s0 = inlined_call_operand.vmem [shape: f32[16,32], index: 0, kind: input, shape index: {}]   ;;  %s3347_s1 = inlined_call_operand.vmem [shape: f32[4,1,8], index: 1, kind: input, shape index: {}]   ;;  %s3348_s2 = inlined_call_operand.vmem [shape: f32[2,3], index: 2, kind: input, shape index: {}]   ;;  %s3349_s3 = inlined_call_operand.vmem [shape: bf16[2,32,96], index: 3, kind: input, shape index: {}]   ;;  %s3350_s4 = inlined_call_operand.vmem [shape: bf16[2,32,32], index: 4, kind: input, shape index: {}]   ;;  %s3351_s5 = inlined_call_operand.vmem [shape: bf16[2,32,64], index: 5, kind: input, shape index: {}]   ;;  %s3352_s6 = inlined_call_operand.vmem [shape: bf16[2,64,32], index: 6, kind: input, shape index: {}]   ;;  %s3353_s7 = inlined_call_operand.vmem [shape: bf16[32,35], index: 7, kind: input, shape index: {}]   ;;  %s3354_s8 = inlined_call_operand.vmem [shape: f32[2,352], index: 8, kind: input, shape index: {}]   ;;  %s3355_s9 = inlined_call_operand.vmem [shape: f32[1,99], index: 9, kind: input, shape index: {}]   ;;  %s3356_s10 = inlined_call_operand.hbm [shape: f32[2,3], index: 10, kind: output, shape index: {0}]   ;;  %s3357_s11 = inlined_call_operand.hbm [shape: f32[1,1], index: 11, kind: output, shape index: {1}]  }
   0x1   :  { %v40_v0 = vld [vmem:[%s3346_s0] sm:$0xff]  ;;  %v41_v1 = vld [vmem:[%s3346_s0 + $0x8] sm:$0xff] }
   0x2   :  { %v44_v2 = vsel %vm43_vm0, %v40_v0, 0.0  ;;  %v47_v3 = vsel %vm43_vm0, %v41_v1, 0.0 }
   0x3   :  { %45 = vadd.xlane.f32.xlu0 %v44_v2 }
   0x7   :  { %48 = vadd.xlane.f32.xlu0 %v47_v3 }
   0x8   :  { %18 = vsyncpa [#allocation5], 0  ;;  %v2402_v4 = vld [vmem:[%s3355_s9] ss:$0 sm:$0xff]  ;;  %s2877_s23 = smov 96   ;;  %v2745_v15 = vld [vmem:[%s3349_s3 + $0x8] sm:$0xff]  }
   0x9   :  { %v2878_v16 = vmov 0.0   ;;  %v2746_v17 = vld [vmem:[%s3349_s3] sm:$0xff]   ;;  %vm2879_vm1 = vmmov 0   ;;  %s2880_s29 = smov 112   ;;  %vm185_vm2 = vcmask 130048   ;;  %vm488_vm3 = vcmask 64512  }
   0xa   :  { %2558 = vmatprep.subr.bf16.mxu0 %v2878_v16  ;;  %2566 = vmatprep.subr.mxu1 %v2878_v16  ;;  %v2986_v34 = vld [vmem:[%s3354_s8] ss:$0 sm:$0xff]  ;;  %v3037_v49 = vld [vmem:[%s3347_s1 + $0x1] ss:$0 sm:$0xff]  ;;  %v3043_v53 = vld [vmem:[%s3347_s1 + $0x3] ss:$0 sm:$0xff] }
   0xb   :  { %2559 = vmatpush3.bf16.msra.mxu0 %v2745_v15  ;;  %2562 = vmatprep.mubr.msk.bf16.mxu0 %vm2879_vm1, %v2878_v16  ;;  %v3049_v55 = vld [vmem:[%s3347_s1] ss:$0 sm:$0xff]  ;;  %v3057_v63 = vld [vmem:[%s3347_s1 + $0x2] ss:$0 sm:$0xff]  ;;  %s2881_s1 = smov 64   ;;  %s2882_s0 = smov 16  }
   0xc   :  { %2560 = vmatprep.subr.bf16.mxu0 %v2878_v16  ;;  %2568 = vmatprep.mubr.msk.f32.mxu1 %vm2879_vm1, %v2878_v16  ;;  %s2883_s24 = smov 32   ;;  %vm1078_vm4 = vcmask 523264   ;;  %vm2217_vm5 = vcmask 1040384   ;;  %vm2342_vm6 = vcmask 17408  }
   0xf   :  { %2561 = vmatpush3.bf16.msra.mxu0 %v2746_v17 }
  0x10   :  { %2581 = vmatprep.subr.mxu0 %v2878_v16 }
  0x1d   :  { %78 = vrot.lane.b32.xlu0 %v2402_v4, %s2877_s23 }
  0x8c   :  { %v46_v5 = vpop.xlane.xlu0 %45 }
  0x8d   :  { %v50_v6 = vmul.f32 0.03125, %v46_v5 }
  0x8f   :  { %v52_v7 = vsub.f32 %v40_v0, %v50_v6 }
  0x90   :  { %v49_v8 = vpop.xlane.xlu0 %48 }
  0x91   :  { %v51_v9 = vmul.f32 0.03125, %v49_v8  ;;  %v54_v10 = vmul.f32 %v52_v7, %v52_v7 }
  0x93   :  { %v53_v11 = vsub.f32 %v41_v1, %v51_v9  ;;  %v56_v12 = vsel %vm43_vm0, %v54_v10, 0.0 }
  0x94   :  { %57 = vadd.xlane.f32.xlu1 %v56_v12  ;;  %v79_v29 = vpop.permute.xlu0 %78 }
  0x95   :  { %v55_v13 = vmul.f32 %v53_v11, %v53_v11 }
  0x97   :  { %v59_v14 = vsel %vm43_vm0, %v55_v13, 0.0 }
  0x98   :  { %60 = vadd.xlane.f32.xlu1 %v59_v14 }
 0x11d   :  { %v58_v18 = vpop.xlane.xlu1 %57 }
 0x11e   :  { %v62_v19 = vmul.f32 0.03125, %v58_v18 }
 0x120   :  { %v64_v20 = vadd.f32 1e-05, %v62_v19 }
 0x121   :  { %v61_v21 = vpop.xlane.xlu1 %60 }
 0x122   :  { %2767 = vrsqrt.f32 %v64_v20  ;;  %v63_v22 = vmul.f32 0.03125, %v61_v21 }
 0x124   :  { %v65_v23 = vadd.f32 1e-05, %v63_v22 }
 0x126   :  { %2769 = vrsqrt.f32 %v65_v23 }
 0x12f   :  { %v2768_v24 = vpop.eup %2767 }
 0x130   :  { %v68_v25 = vmul.f32 %v2768_v24, %v52_v7 }
 0x132   :  { %v76_v28 = vmul.f32 %v2402_v4, %v68_v25 }
 0x133   :  { %v2770_v26 = vpop.eup %2769 }
 0x134   :  { %v69_v27 = vmul.f32 %v2770_v26, %v53_v11  ;;  %v2974_v31 = vadd.f32 %v79_v29, %v76_v28 }
 0x136   :  { %v77_v30 = vmul.f32 %v2402_v4, %v69_v27 }
 0x138   :  { %v2976_v32 = vadd.f32 %v79_v29, %v77_v30 }
 0x13a   :  { %v87_v33 = vpack.c.bf16 %v2976_v32, %v2974_v31 }
 0x13c   :  { %2563 = vmatmul.mubr.msk.bf16.vlgmr.msra.gmra.mxu0 %vm43_vm0, %v87_v33 }
 0x13d   :  { %2583 = vmatprep.mubr.msk.f32.mxu0 %vm2879_vm1, %v2878_v16 }
 0x1fc   :  { %v146_v35 = vpop.f32.mrf.mxu0 }
 0x1fd   :  { %v2989_v36 = vadd.f32 %v2986_v34, %v146_v35 }
 0x1fe   :  { %v2564_v37 = vpop.f32.mrf.mxu0 }
 0x1ff   :  { %154 = vrot.lane.b32.xlu1 %v2989_v36, %s2880_s29 }
 0x200   :  { %v149_v38 = vpop.f32.mrf.mxu0 }
 0x201   :  { %v2994_v39 = vadd.f32 %v2986_v34, %v149_v38 }
 0x202   :  { %v2565_v40 = vpop.f32.mrf.mxu0 }
 0x203   :  { %157 = vrot.lane.b32.xlu1 %v2994_v39, %s2880_s29 }
 0x207   :  { %183 = vrot.lane.b32.xlu1 %v2989_v36, %s2877_s23 }
 0x271   :  { %v3000_v41 = vpop.permute.xlu1 %154 }
 0x272   :  { %260 = vrot.lane.b32.xlu0 %v3000_v41, %s2877_s23 }
 0x275   :  { %v3004_v42 = vpop.permute.xlu1 %157 }
 0x276   :  { %336 = vrot.lane.b32.xlu0 %v2994_v39, %s2877_s23  ;;  %412 = vrot.lane.b32.xlu1 %v3004_v42, %s2877_s23 }
 0x279   :  { %v184_v43 = vpop.permute.xlu1 %183 }
 0x27a   :  { %2567 = vmatpush3.xpose.msk.msra.mxu1 %vm185_vm2, %v184_v43  ;;  %v2747_v43 = vld [vmem:[%s3350_s4 + $0x8] sm:$0xff]  }
 0x27b   :  { %2571 = vmatprep.subr.mxu1 %v2878_v16 }
 0x27d   :  { %2569 = vmatmul.mubr.msk.f32.vlgmr.msra.gmra.mxu1 %vm185_vm2, %v2989_v36 }
 0x27e   :  { %2573 = vmatprep.mubr.msk.f32.mxu1 %vm2879_vm1, %v2878_v16 }
 0x2e4   :  { %v261_v44 = vpop.permute.xlu0 %260 }
 0x2e5   :  { %2572 = vmatpush3.xpose.msk.msra.mxu1 %vm185_vm2, %v261_v44  ;;  %v2748_v44 = vld [vmem:[%s3350_s4] sm:$0xff]  }
 0x2e6   :  { %2576 = vmatprep.subr.mxu1 %v2878_v16 }
 0x2e8   :  { %v337_v45 = vpop.permute.xlu0 %336  ;;  %2574 = vmatmul.mubr.msk.f32.vlgmr.msra.gmra.mxu1 %vm185_vm2, %v3000_v41  ;;  %v413_v46 = vpop.permute.xlu1 %412 }
 0x2e9   :  { %2577 = vmatpush3.xpose.msk.msra.mxu1 %vm185_vm2, %v337_v45  ;;  %2582 = vmatpush3.xpose.msk.msra.mxu0 %vm185_vm2, %v413_v46 }
 0x2ea   :  { %2578 = vmatprep.mubr.msk.f32.mxu1 %vm2879_vm1, %v2878_v16  ;;  %2591 = vmatprep.subr.mxu0 %v2878_v16 }
 0x2eb   :  { %2586 = vmatprep.subr.mxu1 %v2878_v16 }
 0x2ec   :  { %2579 = vmatmul.mubr.msk.f32.vlgmr.msra.gmra.mxu1 %vm185_vm2, %v2994_v39  ;;  %2584 = vmatmul.mubr.msk.f32.vlgmr.msra.gmra.mxu0 %vm185_vm2, %v3004_v42 }
 0x2ed   :  { %2593 = vmatprep.mubr.msk.f32.mxu0 %vm2879_vm1, %v2878_v16  ;;  %2588 = vmatprep.mubr.msk.f32.mxu1 %vm2879_vm1, %v2878_v16 }
 0x33d   :  { %v256_v47 = vpop.f32.mrf.mxu1 }
 0x33e   :  { %v257_v61 = vadd.f32 %v3049_v55, %v256_v47 }
 0x33f   :  { %v2570_v48 = vpop.f32.mrf.mxu1 }
 0x340   :  { %v489_v1 = vsel %vm488_vm3, %v257_v61, -inf }
 0x3a8   :  { %v332_v50 = vpop.f32.mrf.mxu1 }
 0x3a9   :  { %v333_v51 = vadd.f32 %v3037_v49, %v332_v50 }
 0x3aa   :  { %v2575_v52 = vpop.f32.mrf.mxu1 }
 0x3ab   :  { %v492_v54 = vsel %vm488_vm3, %v333_v51, -inf }
 0x3ac   :  { %493 = vmax.xlane.f32.xlu1 %v492_v54  ;;  %v408_v56 = vpop.f32.mrf.mxu1  ;;  %v484_v57 = vpop.f32.mrf.mxu0 }
 0x3ad   :  { %v485_v58 = vadd.f32 %v3043_v53, %v484_v57  ;;  %v409_v0 = vadd.f32 %v3057_v63, %v408_v56 }
 0x3ae   :  { %v2580_v59 = vpop.f32.mrf.mxu1  ;;  %v2585_v60 = vpop.f32.mrf.mxu0 }
 0x3af   :  { %v498_v62 = vsel %vm488_vm3, %v485_v58, -inf  ;;  %v495_v2 = vsel %vm488_vm3, %v409_v0, -inf }
 0x3b0   :  { %499 = vmax.xlane.f32.xlu0 %v498_v62 }
 0x3b4   :  { %490 = vmax.xlane.f32.xlu0 %v489_v1 }
 0x3b8   :  { %496 = vmax.xlane.f32.xlu0 %v495_v2 }
 0x435   :  { %v494_v3 = vpop.xlane.xlu1 %493 }
 0x436   :  { %v502_v4 = vsub.f32 %v333_v51, %v494_v3 }
 0x438   :  { %v507_v5 = vmul.f32 1.442695, %v502_v4 }
 0x439   :  { %v500_v6 = vpop.xlane.xlu0 %499 }
 0x43a   :  { %2771 = vpow2.f32 %v507_v5  ;;  %v504_v7 = vsub.f32 %v485_v58, %v500_v6 }
 0x43c   :  { %v511_v8 = vmul.f32 1.442695, %v504_v7 }
 0x43d   :  { %v491_v13 = vpop.xlane.xlu0 %490 }
 0x43e   :  { %2773 = vpow2.f32 %v511_v8  ;;  %v501_v14 = vsub.f32 %v257_v61, %v491_v13 }
 0x440   :  { %v505_v17 = vmul.f32 1.442695, %v501_v14 }
 0x441   :  { %v497_v15 = vpop.xlane.xlu0 %496 }
 0x442   :  { %v503_v18 = vsub.f32 %v409_v0, %v497_v15  ;;  %2775 = vpow2.f32 %v505_v17 }
 0x444   :  { %v509_v19 = vmul.f32 1.442695, %v503_v18 }
 0x446   :  { %2777 = vpow2.f32 %v509_v19 }
 0x447   :  { %v2772_v9 = vpop.eup %2771 }
 0x448   :  { %v516_v10 = vsel %vm488_vm3, %v2772_v9, 0.0 }
 0x449   :  { %517 = vadd.xlane.f32.xlu1 %v516_v10  ;;  %v2427_v10 = vld [vmem:[%s3354_s8 + $0x2] ss:$0 sm:$0xff] }
 0x44b   :  { %v2774_v11 = vpop.eup %2773 }
 0x44c   :  { %v522_v12 = vsel %vm488_vm3, %v2774_v11, 0.0 }
 0x44d   :  { %523 = vadd.xlane.f32.xlu0 %v522_v12 }
 0x44f   :  { %v2776_v20 = vpop.eup %2775 }
 0x450   :  { %v513_v21 = vsel %vm488_vm3, %v2776_v20, 0.0 }
 0x453   :  { %v2778_v22 = vpop.eup %2777 }
 0x454   :  { %v519_v23 = vsel %vm488_vm3, %v2778_v22, 0.0 }
 0x45a   :  { %609 = vrot.lane.b32.xlu1 %v3000_v41, %s2881_s1 }
 0x463   :  { %761 = vrot.lane.b32.xlu0 %v3004_v42, %s2881_s1 }
 0x47e   :  { %514 = vadd.xlane.f32.xlu1 %v513_v21  ;;  %v2750_v21 = vld [vmem:[%s3351_s5] sm:$0xff]  }
 0x482   :  { %520 = vadd.xlane.f32.xlu0 %v519_v23 }
 0x48f   :  { %533 = vrot.lane.b32.xlu1 %v2989_v36, %s2881_s1 }
 0x498   :  { %685 = vrot.lane.b32.xlu0 %v2994_v39, %s2881_s1 }
 0x4d2   :  { %v518_v24 = vpop.xlane.xlu1 %517 }
 0x4d3   :  { %2779 = vrcp.f32 %v518_v24 }
 0x4d6   :  { %v610_v25 = vpop.permute.xlu1 %609  ;;  %v524_v26 = vpop.xlane.xlu0 %523 }
 0x4d7   :  { %2781 = vrcp.f32 %v524_v26  ;;  %2592 = vmatpush3.msra.mxu0 %v610_v25 }
 0x4d8   :  { %2601 = vmatprep.subr.mxu0 %v2878_v16 }
 0x4da   :  { %v762_v29 = vpop.permute.xlu0 %761 }
 0x4e0   :  { %v2780_v27 = vpop.eup %2779 }
 0x4e1   :  { %v530_v28 = vmul.f32 %v2780_v27, %v2772_v9 }
 0x4e3   :  { %2594 = vmatmul.mubr.msk.f32.vlgmr.msra.gmra.mxu0 %vm488_vm3, %v530_v28 }
 0x4e4   :  { %v2782_v30 = vpop.eup %2781  ;;  %2602 = vmatpush3.msra.mxu0 %v762_v29  ;;  %2603 = vmatprep.mubr.msk.f32.mxu0 %vm2879_vm1, %v2878_v16 }
 0x4e5   :  { %v532_v33 = vmul.f32 %v2782_v30, %v2774_v11  ;;  %2614 = vmatprep.subr.bf16.mxu0 %v2878_v16 }
 0x4e7   :  { %2604 = vmatmul.mubr.msk.f32.vlgmr.msra.gmra.mxu0 %vm488_vm3, %v532_v33 }
 0x4e8   :  { %2618 = vmatprep.mubr.msk.bf16.mxu0 %vm2879_vm1, %v2878_v16 }
 0x507   :  { %v515_v35 = vpop.xlane.xlu1 %514 }
 0x508   :  { %2783 = vrcp.f32 %v515_v35 }
 0x50b   :  { %v534_v36 = vpop.permute.xlu1 %533  ;;  %v521_v37 = vpop.xlane.xlu0 %520 }
 0x50c   :  { %2785 = vrcp.f32 %v521_v37  ;;  %2587 = vmatpush3.msra.mxu1 %v534_v36 }
 0x50d   :  { %2596 = vmatprep.subr.mxu1 %v2878_v16 }
 0x50f   :  { %v686_v40 = vpop.permute.xlu0 %685 }
 0x515   :  { %v2784_v38 = vpop.eup %2783 }
 0x516   :  { %v529_v39 = vmul.f32 %v2784_v38, %v2776_v20  ;;  %v2749_v20 = vld [vmem:[%s3351_s5 + $0x8] sm:$0xff]  }
 0x517   :  { %2615 = vmatpush3.bf16.msra.mxu0 %v2749_v20 }
 0x518   :  { %2589 = vmatmul.mubr.msk.f32.vlgmr.msra.gmra.mxu1 %vm488_vm3, %v529_v39  ;;  %2616 = vmatprep.subr.bf16.mxu0 %v2878_v16 }
 0x519   :  { %v2786_v41 = vpop.eup %2785  ;;  %2597 = vmatpush3.msra.mxu1 %v686_v40  ;;  %2598 = vmatprep.mubr.msk.f32.mxu1 %vm2879_vm1, %v2878_v16 }
 0x51a   :  { %v531_v42 = vmul.f32 %v2786_v41, %v2778_v22  ;;  %2606 = vmatprep.subr.bf16.mxu1 %v2878_v16  ;;  %v2751_v41 = vld [vmem:[%s3352_s6 + $0x18] sm:$0xff]  }
 0x51b   :  { %2617 = vmatpush3.bf16.msra.mxu0 %v2750_v21 }
 0x51c   :  { %2599 = vmatmul.mubr.msk.f32.vlgmr.msra.gmra.mxu1 %vm488_vm3, %v531_v42  ;;  %2634 = vmatprep.subr.bf16.mxu0 %v2878_v16  ;;  %v2752_v42 = vld [vmem:[%s3352_s6 + $0x10] sm:$0xff]  }
 0x51d   :  { %2610 = vmatprep.mubr.msk.bf16.mxu1 %vm2879_vm1, %v2878_v16  ;;  %2607 = vmatpush3.bf16.msra.mxu1 %v2747_v43  ;;  %v2753_v43 = vld [vmem:[%s3352_s6 + $0x8] sm:$0xff]  }
 0x51e   :  { %2608 = vmatprep.subr.bf16.mxu1 %v2878_v16 }
 0x521   :  { %2609 = vmatpush3.bf16.msra.mxu1 %v2748_v44  ;;  %v2754_v44 = vld [vmem:[%s3352_s6] sm:$0xff]  }
 0x522   :  { %2622 = vmatprep.subr.bf16.mxu1 %v2878_v16 }
 0x5a3   :  { %v681_v45 = vpop.f32.mrf.mxu0 }
 0x5a5   :  { %v2595_v46 = vpop.f32.mrf.mxu0 }
 0x5a7   :  { %v833_v47 = vpop.f32.mrf.mxu0 }
 0x5a8   :  { %v2735_v48 = vpack.i.bf16 %v833_v47, %v681_v45 }
 0x5a9   :  { %v2605_v50 = vpop.f32.mrf.mxu0 }
 0x5aa   :  { %2736 = vrot.lane.b32.xlu1 %v2735_v48, %s2882_s0 }
 0x5ae   :  { %870 = vrot.lane.b32.xlu1 %v2986_v34, %s2883_s24 }
 0x5d8   :  { %v605_v51 = vpop.f32.mrf.mxu1 }
 0x5da   :  { %v2590_v52 = vpop.f32.mrf.mxu1 }
 0x5dc   :  { %v757_v54 = vpop.f32.mrf.mxu1 }
 0x5de   :  { %v2600_v56 = vpop.f32.mrf.mxu1 }
 0x61c   :  { %v2737_v57 = vpop.permute.xlu1 %2736 }
 0x61d   :  { %v2739_v58 = vunpack.i.h.bf16 %v2737_v57  ;;  %v2738_v59 = vunpack.i.l.bf16 %v2737_v57 }
 0x61f   :  { %v846_v60 = vsel %vm185_vm2, %v757_v54, %v2739_v58  ;;  %v841_v61 = vsel %vm185_vm2, %v605_v51, %v2738_v59 }
 0x620   :  { %v847_v62 = vpack.c.bf16 %v846_v60, %v841_v61  ;;  %v871_v0 = vpop.permute.xlu1 %870 }
 0x622   :  { %2611 = vmatmul.mubr.msk.bf16.vlgmr.msra.gmra.mxu1 %vm43_vm0, %v847_v62 }
 0x623   :  { %2630 = vmatprep.mubr.msk.bf16.mxu1 %vm2879_vm1, %v2878_v16  ;;  %2623 = vmatpush3.bf16.msra.mxu1 %v2751_v41 }
 0x624   :  { %2624 = vmatprep.subr.bf16.mxu1 %v2878_v16 }
 0x627   :  { %2625 = vmatpush3.bf16.msra.mxu1 %v2752_v42 }
 0x628   :  { %2626 = vmatprep.subr.bf16.mxu1 %v2878_v16 }
 0x62b   :  { %2627 = vmatpush3.bf16.msra.mxu1 %v2753_v43 }
 0x62c   :  { %2628 = vmatprep.subr.bf16.mxu1 %v2878_v16 }
 0x62f   :  { %2629 = vmatpush3.bf16.msra.mxu1 %v2754_v44 }
 0x630   :  { %2652 = vmatprep.subr.mxu1 %v2878_v16 }
 0x6e2   :  { %v910_v1 = vpop.f32.mrf.mxu1 }
 0x6e3   :  { %v911_v34 = vadd.f32 %v910_v1, %v871_v0 }
 0x6e4   :  { %v2612_v2 = vpop.f32.mrf.mxu1 }
 0x6e5   :  { %v917_v3 = vadd.f32 %v911_v34, %v2974_v31 }
 0x6e6   :  { %v913_v4 = vpop.f32.mrf.mxu1 }
 0x6e7   :  { %v914_v5 = vadd.f32 %v913_v4, %v871_v0  ;;  %v920_v6 = vsel %vm43_vm0, %v917_v3, 0.0 }
 0x6e8   :  { %921 = vadd.xlane.f32.xlu1 %v920_v6  ;;  %v2613_v7 = vpop.f32.mrf.mxu1 }
 0x6e9   :  { %v918_v8 = vadd.f32 %v914_v5, %v2976_v32 }
 0x6eb   :  { %v923_v9 = vsel %vm43_vm0, %v918_v8, 0.0 }
 0x6ec   :  { %924 = vadd.xlane.f32.xlu0 %v923_v9 }
 0x6f9   :  { %953 = vrot.lane.b32.xlu1 %v2427_v10, %s2877_s23 }
 0x771   :  { %v922_v11 = vpop.xlane.xlu1 %921 }
 0x772   :  { %v926_v12 = vmul.f32 0.03125, %v922_v11 }
 0x774   :  { %v928_v31 = vsub.f32 %v917_v3, %v926_v12 }
 0x775   :  { %v925_v13 = vpop.xlane.xlu0 %924  ;;  %v954_v36 = vpop.permute.xlu1 %953 }
 0x776   :  { %v927_v14 = vmul.f32 0.03125, %v925_v13  ;;  %v930_v15 = vmul.f32 %v928_v31, %v928_v31 }
 0x778   :  { %v929_v17 = vsub.f32 %v918_v8, %v927_v14  ;;  %v932_v18 = vsel %vm43_vm0, %v930_v15, 0.0 }
 0x779   :  { %933 = vadd.xlane.f32.xlu0 %v932_v18 }
 0x77a   :  { %v931_v32 = vmul.f32 %v929_v17, %v929_v17 }
 0x77c   :  { %v935_v19 = vsel %vm43_vm0, %v931_v32, 0.0 }
 0x77d   :  { %936 = vadd.xlane.f32.xlu0 %v935_v19 }
 0x793   :  { %975 = vrot.lane.b32.xlu0 %v2427_v10, %s2881_s1 }
 0x802   :  { %v934_v22 = vpop.xlane.xlu0 %933 }
 0x803   :  { %v938_v23 = vmul.f32 0.03125, %v934_v22 }
 0x805   :  { %v940_v24 = vadd.f32 1e-05, %v938_v23 }
 0x806   :  { %v937_v25 = vpop.xlane.xlu0 %936 }
 0x807   :  { %2787 = vrsqrt.f32 %v940_v24  ;;  %v939_v26 = vmul.f32 0.03125, %v937_v25 }
 0x809   :  { %v941_v27 = vadd.f32 1e-05, %v939_v26 }
 0x80a   :  { %v976_v45 = vpop.permute.xlu0 %975 }
 0x80b   :  { %2789 = vrsqrt.f32 %v941_v27 }
 0x814   :  { %v2788_v28 = vpop.eup %2787 }
 0x815   :  { %v944_v29 = vmul.f32 %v2788_v28, %v928_v31 }
 0x817   :  { %v950_v35 = vmul.f32 %v2427_v10, %v944_v29 }
 0x818   :  { %v2790_v30 = vpop.eup %2789 }
 0x819   :  { %v945_v33 = vmul.f32 %v2790_v30, %v929_v17  ;;  %v956_v38 = vadd.f32 %v954_v36, %v950_v35  ;;  %v2755_v30 = vld [vmem:[%s3349_s3 + $0x18] sm:$0xff]  }
 0x81b   :  { %v951_v37 = vmul.f32 %v2427_v10, %v945_v33  ;;  %v2431_v10 = vld [vmem:[%s3354_s8 + $0x4] ss:$0 sm:$0xff]  ;;  %v2756_v33 = vld [vmem:[%s3349_s3 + $0x10] sm:$0xff]  }
 0x81d   :  { %v957_v39 = vadd.f32 %v954_v36, %v951_v37 }
 0x81f   :  { %v958_v40 = vpack.c.bf16 %v957_v39, %v956_v38 }
 0x821   :  { %2619 = vmatmul.mubr.msk.bf16.vlgmr.msra.gmra.mxu0 %vm43_vm0, %v958_v40 }
 0x822   :  { %2638 = vmatprep.mubr.msk.bf16.mxu0 %vm2879_vm1, %v2878_v16  ;;  %2635 = vmatpush3.bf16.msra.mxu0 %v2755_v30 }
 0x823   :  { %2636 = vmatprep.subr.bf16.mxu0 %v2878_v16 }
 0x826   :  { %2637 = vmatpush3.bf16.msra.mxu0 %v2756_v33 }
 0x827   :  { %2642 = vmatprep.subr.mxu0 %v2878_v16 }
 0x8e1   :  { %v1015_v46 = vpop.f32.mrf.mxu0 }
 0x8e2   :  { %v1016_v47 = vadd.f32 %v1015_v46, %v976_v45 }
 0x8e3   :  { %v2620_v48 = vpop.f32.mrf.mxu0 }
 0x8e4   :  { %v1022_v50 = vmul.f32 %v1016_v47, %v1016_v47 }
 0x8e5   :  { %v1018_v51 = vpop.f32.mrf.mxu0 }
 0x8e6   :  { %v1024_v52 = vmul.f32 %v1022_v50, %v1016_v47  ;;  %v1019_v54 = vadd.f32 %v1018_v51, %v976_v45 }
 0x8e7   :  { %v2621_v56 = vpop.f32.mrf.mxu0 }
 0x8e8   :  { %v1026_v57 = vmul.f32 0.044715, %v1024_v52  ;;  %v1023_v58 = vmul.f32 %v1019_v54, %v1019_v54 }
 0x8ea   :  { %v1028_v59 = vadd.f32 %v1026_v57, %v1016_v47  ;;  %v1025_v60 = vmul.f32 %v1023_v58, %v1019_v54 }
 0x8ec   :  { %v1030_v61 = vmul.f32 0.7978846, %v1028_v59  ;;  %v1027_v62 = vmul.f32 0.044715, %v1025_v60 }
 0x8ee   :  { %2791 = vtanh.f32 %v1030_v61  ;;  %v1029_v0 = vadd.f32 %v1027_v62, %v1019_v54 }
 0x8f0   :  { %v1031_v1 = vmul.f32 0.7978846, %v1029_v0 }
 0x8f2   :  { %2793 = vtanh.f32 %v1031_v1 }
 0x8fb   :  { %v2792_v34 = vpop.eup %2791 }
 0x8fc   :  { %v1034_v2 = vadd.f32 1.0, %v2792_v34 }
 0x8fe   :  { %v1036_v4 = vmul.f32 0.5, %v1034_v2 }
 0x8ff   :  { %v2794_v3 = vpop.eup %2793 }
 0x900   :  { %v1035_v5 = vadd.f32 1.0, %v2794_v3  ;;  %v1038_v7 = vmul.f32 %v1036_v4, %v1016_v47 }
 0x902   :  { %v1037_v6 = vmul.f32 0.5, %v1035_v5 }
 0x904   :  { %v1039_v8 = vmul.f32 %v1037_v6, %v1019_v54  ;;  %v3176_v54 = vld [vmem:[%s3354_s8 + $0x1] ss:$0 sm:$0xff] }
 0x906   :  { %v1040_v9 = vpack.c.bf16 %v1039_v8, %v1038_v7 }
 0x908   :  { %2631 = vmatmul.mubr.msk.bf16.vlgmr.msra.gmra.mxu1 %vm1078_vm4, %v1040_v9 }
 0x909   :  { %2654 = vmatprep.mubr.msk.f32.mxu1 %vm2879_vm1, %v2878_v16 }
 0x9c8   :  { %v1116_v11 = vpop.f32.mrf.mxu1 }
 0x9c9   :  { %v1117_v12 = vadd.f32 %v2431_v10, %v1116_v11 }
 0x9ca   :  { %v2632_v31 = vpop.f32.mrf.mxu1 }
 0x9cb   :  { %v1123_v13 = vadd.f32 %v1117_v12, %v956_v38 }
 0x9cc   :  { %v1119_v14 = vpop.f32.mrf.mxu1 }
 0x9cd   :  { %v1120_v15 = vadd.f32 %v2431_v10, %v1119_v14  ;;  %v1125_v17 = vsel %vm43_vm0, %v1123_v13, 0.0 }
 0x9ce   :  { %1126 = vadd.xlane.f32.xlu1 %v1125_v17  ;;  %v2633_v18 = vpop.f32.mrf.mxu1 }
 0x9cf   :  { %v1124_v32 = vadd.f32 %v1120_v15, %v957_v39 }
 0x9d1   :  { %v1128_v19 = vsel %vm43_vm0, %v1124_v32, 0.0 }
 0x9d2   :  { %1129 = vadd.xlane.f32.xlu0 %v1128_v19 }
 0xa57   :  { %v1127_v20 = vpop.xlane.xlu1 %1126 }
 0xa58   :  { %v1131_v21 = vmul.f32 0.03125, %v1127_v20 }
 0xa5a   :  { %v1133_v22 = vsub.f32 %v1123_v13, %v1131_v21 }
 0xa5b   :  { %v1130_v23 = vpop.xlane.xlu0 %1129 }
 0xa5c   :  { %v1132_v24 = vmul.f32 0.03125, %v1130_v23  ;;  %v1135_v25 = vmul.f32 %v1133_v22, %v1133_v22 }
 0xa5e   :  { %v1134_v26 = vsub.f32 %v1124_v32, %v1132_v24  ;;  %v1137_v27 = vsel %vm43_vm0, %v1135_v25, 0.0 }
 0xa5f   :  { %1138 = vadd.xlane.f32.xlu1 %v1137_v27 }
 0xa60   :  { %v1136_v28 = vmul.f32 %v1134_v26, %v1134_v26 }
 0xa62   :  { %v1140_v29 = vsel %vm43_vm0, %v1136_v28, 0.0 }
 0xa63   :  { %1141 = vadd.xlane.f32.xlu0 %v1140_v29 }
 0xa70   :  { %1152 = vrot.lane.b32.xlu1 %v2431_v10, %s2877_s23 }
 0xa79   :  { %1157 = vrot.lane.b32.xlu0 %v2431_v10, %s2881_s1 }
 0xae8   :  { %v1139_v35 = vpop.xlane.xlu1 %1138 }
 0xae9   :  { %v1143_v36 = vmul.f32 0.03125, %v1139_v35 }
 0xaeb   :  { %v1145_v37 = vadd.f32 1e-05, %v1143_v36 }
 0xaec   :  { %v1142_v38 = vpop.xlane.xlu0 %1141  ;;  %v1153_v43 = vpop.permute.xlu1 %1152 }
 0xaed   :  { %2795 = vrsqrt.f32 %v1145_v37  ;;  %v1144_v39 = vmul.f32 0.03125, %v1142_v38 }
 0xaef   :  { %v1146_v40 = vadd.f32 1e-05, %v1144_v39 }
 0xaf0   :  { %v1158_v47 = vpop.permute.xlu0 %1157 }
 0xaf1   :  { %2797 = vrsqrt.f32 %v1146_v40 }
 0xafa   :  { %v2796_v41 = vpop.eup %2795 }
 0xafb   :  { %v1149_v42 = vmul.f32 %v2796_v41, %v1133_v22 }
 0xafd   :  { %v1155_v46 = vmul.f32 %v1153_v43, %v1149_v42 }
 0xafe   :  { %v2798_v44 = vpop.eup %2797 }
 0xaff   :  { %v1150_v45 = vmul.f32 %v2798_v44, %v1134_v26  ;;  %v3164_v50 = vadd.f32 %v1158_v47, %v1155_v46 }
 0xb01   :  { %v1156_v48 = vmul.f32 %v1153_v43, %v1150_v45 }
 0xb03   :  { %v3166_v51 = vadd.f32 %v1158_v47, %v1156_v48 }
 0xb05   :  { %v1162_v52 = vpack.c.bf16 %v3166_v51, %v3164_v50 }
 0xb07   :  { %2639 = vmatmul.mubr.msk.bf16.vlgmr.msra.gmra.mxu0 %vm43_vm0, %v1162_v52 }
 0xb08   :  { %2644 = vmatprep.mubr.msk.f32.mxu0 %vm2879_vm1, %v2878_v16 }
 0xbc7   :  { %v1222_v56 = vpop.f32.mrf.mxu0 }
 0xbc8   :  { %v3179_v57 = vadd.f32 %v3176_v54, %v1222_v56 }
 0xbc9   :  { %v2640_v58 = vpop.f32.mrf.mxu0 }
 0xbca   :  { %1230 = vrot.lane.b32.xlu1 %v3179_v57, %s2880_s29 }
 0xbcb   :  { %v1225_v59 = vpop.f32.mrf.mxu0 }
 0xbcc   :  { %v3184_v60 = vadd.f32 %v3176_v54, %v1225_v59 }
 0xbcd   :  { %v2641_v61 = vpop.f32.mrf.mxu0 }
 0xbce   :  { %1233 = vrot.lane.b32.xlu1 %v3184_v60, %s2880_s29  ;;  %v2758_v61 = vld [vmem:[%s3350_s4 + $0x10] sm:$0xff]  }
 0xbd2   :  { %1235 = vrot.lane.b32.xlu1 %v3179_v57, %s2877_s23 }
 0xc3c   :  { %v1231_v62 = vpop.permute.xlu1 %1230 }
 0xc3d   :  { %1311 = vrot.lane.b32.xlu0 %v1231_v62, %s2877_s23 }
 0xc40   :  { %v1234_v0 = vpop.permute.xlu1 %1233 }
 0xc41   :  { %1387 = vrot.lane.b32.xlu0 %v3184_v60, %s2877_s23  ;;  %1463 = vrot.lane.b32.xlu1 %v1234_v0, %s2877_s23 }
 0xc44   :  { %v1236_v1 = vpop.permute.xlu1 %1235 }
 0xc45   :  { %2643 = vmatpush3.xpose.msk.msra.mxu0 %vm185_vm2, %v1236_v1 }
 0xc46   :  { %2647 = vmatprep.subr.mxu0 %v2878_v16 }
 0xc48   :  { %2645 = vmatmul.mubr.msk.f32.vlgmr.msra.gmra.mxu0 %vm185_vm2, %v3179_v57 }
 0xc49   :  { %2649 = vmatprep.mubr.msk.f32.mxu0 %vm2879_vm1, %v2878_v16 }
 0xcaf   :  { %v1312_v34 = vpop.permute.xlu0 %1311 }
 0xcb0   :  { %2648 = vmatpush3.xpose.msk.msra.mxu0 %vm185_vm2, %v1312_v34 }
 0xcb1   :  { %2657 = vmatprep.subr.mxu0 %v2878_v16 }
 0xcb3   :  { %v1388_v2 = vpop.permute.xlu0 %1387  ;;  %2650 = vmatmul.mubr.msk.f32.vlgmr.msra.gmra.mxu0 %vm185_vm2, %v1231_v62  ;;  %v1464_v3 = vpop.permute.xlu1 %1463 }
 0xcb4   :  { %2653 = vmatpush3.xpose.msk.msra.mxu1 %vm185_vm2, %v1388_v2  ;;  %2658 = vmatpush3.xpose.msk.msra.mxu0 %vm185_vm2, %v1464_v3 }
 0xcb5   :  { %2659 = vmatprep.mubr.msk.f32.mxu0 %vm2879_vm1, %v2878_v16  ;;  %2667 = vmatprep.subr.mxu0 %v2878_v16 }
 0xcb6   :  { %2662 = vmatprep.subr.mxu1 %v2878_v16 }
 0xcb7   :  { %2655 = vmatmul.mubr.msk.f32.vlgmr.msra.gmra.mxu1 %vm185_vm2, %v3184_v60  ;;  %2660 = vmatmul.mubr.msk.f32.vlgmr.msra.gmra.mxu0 %vm185_vm2, %v1234_v0 }
 0xcb8   :  { %2669 = vmatprep.mubr.msk.f32.mxu0 %vm2879_vm1, %v2878_v16  ;;  %2664 = vmatprep.mubr.msk.f32.mxu1 %vm2879_vm1, %v2878_v16 }
 0xd08   :  { %v1307_v4 = vpop.f32.mrf.mxu0 }
 0xd09   :  { %v1308_v14 = vadd.f32 %v3049_v55, %v1307_v4 }
 0xd0a   :  { %v2646_v5 = vpop.f32.mrf.mxu0 }
 0xd0b   :  { %v1539_v18 = vsel %vm488_vm3, %v1308_v14, -inf }
 0xd73   :  { %v1383_v6 = vpop.f32.mrf.mxu0 }
 0xd74   :  { %v1384_v7 = vadd.f32 %v3037_v49, %v1383_v6 }
 0xd75   :  { %v2651_v8 = vpop.f32.mrf.mxu0 }
 0xd76   :  { %v1542_v9 = vsel %vm488_vm3, %v1384_v7, -inf }
 0xd77   :  { %v1459_v10 = vpop.f32.mrf.mxu1  ;;  %1543 = vmax.xlane.f32.xlu1 %v1542_v9  ;;  %v1535_v11 = vpop.f32.mrf.mxu0 }
 0xd78   :  { %v1536_v12 = vadd.f32 %v3043_v53, %v1535_v11  ;;  %v1460_v17 = vadd.f32 %v3057_v63, %v1459_v10 }
 0xd79   :  { %v2656_v31 = vpop.f32.mrf.mxu1  ;;  %v2661_v13 = vpop.f32.mrf.mxu0 }
 0xd7a   :  { %v1548_v15 = vsel %vm488_vm3, %v1536_v12, -inf  ;;  %v1545_v49 = vsel %vm488_vm3, %v1460_v17, -inf }
 0xd7b   :  { %1549 = vmax.xlane.f32.xlu0 %v1548_v15 }
 0xd7f   :  { %1540 = vmax.xlane.f32.xlu0 %v1539_v18 }
 0xd83   :  { %1546 = vmax.xlane.f32.xlu0 %v1545_v49 }
 0xe00   :  { %v1544_v32 = vpop.xlane.xlu1 %1543 }
 0xe01   :  { %v1552_v19 = vsub.f32 %v1384_v7, %v1544_v32 }
 0xe03   :  { %v1557_v20 = vmul.f32 1.442695, %v1552_v19 }
 0xe04   :  { %v1550_v21 = vpop.xlane.xlu0 %1549 }
 0xe05   :  { %2799 = vpow2.f32 %v1557_v20  ;;  %v1554_v53 = vsub.f32 %v1536_v12, %v1550_v21  ;;  %v2465_v21 = vld [vmem:[%s3354_s8 + $0x3] ss:$0 sm:$0xff] }
 0xe07   :  { %v1561_v22 = vmul.f32 1.442695, %v1554_v53 }
 0xe08   :  { %v1541_v25 = vpop.xlane.xlu0 %1540 }
 0xe09   :  { %2801 = vpow2.f32 %v1561_v22  ;;  %v1551_v26 = vsub.f32 %v1308_v14, %v1541_v25 }
 0xe0b   :  { %v1555_v28 = vmul.f32 1.442695, %v1551_v26 }
 0xe0c   :  { %v1547_v27 = vpop.xlane.xlu0 %1546 }
 0xe0d   :  { %v1553_v29 = vsub.f32 %v1460_v17, %v1547_v27  ;;  %2803 = vpow2.f32 %v1555_v28  ;;  %v2759_v27 = vld [vmem:[%s3351_s5 + $0x18] sm:$0xff]   ;;  %v2760_v28 = vld [vmem:[%s3351_s5 + $0x10] sm:$0xff]  }
 0xe0f   :  { %v1559_v30 = vmul.f32 1.442695, %v1553_v29 }
 0xe11   :  { %2805 = vpow2.f32 %v1559_v30 }
 0xe12   :  { %v2800_v55 = vpop.eup %2799 }
 0xe13   :  { %v1566_v23 = vsel %vm488_vm3, %v2800_v55, 0.0 }
 0xe14   :  { %1567 = vadd.xlane.f32.xlu1 %v1566_v23 }
 0xe16   :  { %v2802_v24 = vpop.eup %2801 }
 0xe17   :  { %v1572_v63 = vsel %vm488_vm3, %v2802_v24, 0.0 }
 0xe18   :  { %1573 = vadd.xlane.f32.xlu0 %v1572_v63 }
 0xe1a   :  { %v2804_v33 = vpop.eup %2803 }
 0xe1b   :  { %v1563_v35 = vsel %vm488_vm3, %v2804_v33, 0.0 }
 0xe1e   :  { %v2806_v36 = vpop.eup %2805 }
 0xe1f   :  { %v1569_v37 = vsel %vm488_vm3, %v2806_v36, 0.0 }
 0xe25   :  { %1659 = vrot.lane.b32.xlu1 %v1231_v62, %s2881_s1 }
 0xe2e   :  { %1811 = vrot.lane.b32.xlu0 %v1234_v0, %s2881_s1 }
 0xe49   :  { %1564 = vadd.xlane.f32.xlu1 %v1563_v35 }
 0xe4d   :  { %1570 = vadd.xlane.f32.xlu0 %v1569_v37 }
 0xe5a   :  { %1583 = vrot.lane.b32.xlu1 %v3179_v57, %s2881_s1 }
 0xe63   :  { %1735 = vrot.lane.b32.xlu0 %v3184_v60, %s2881_s1  ;;  %v2757_v60 = vld [vmem:[%s3350_s4 + $0x18] sm:$0xff]  }
 0xe9d   :  { %v1568_v38 = vpop.xlane.xlu1 %1567 }
 0xe9e   :  { %2807 = vrcp.f32 %v1568_v38 }
 0xea1   :  { %v1660_v39 = vpop.permute.xlu1 %1659  ;;  %v1574_v40 = vpop.xlane.xlu0 %1573 }
 0xea2   :  { %2809 = vrcp.f32 %v1574_v40  ;;  %2668 = vmatpush3.msra.mxu0 %v1660_v39 }
 0xea3   :  { %2677 = vmatprep.subr.mxu0 %v2878_v16 }
 0xea5   :  { %v1812_v43 = vpop.permute.xlu0 %1811 }
 0xeab   :  { %v2808_v41 = vpop.eup %2807 }
 0xeac   :  { %v1580_v42 = vmul.f32 %v2808_v41, %v2800_v55 }
 0xeae   :  { %2670 = vmatmul.mubr.msk.f32.vlgmr.msra.gmra.mxu0 %vm488_vm3, %v1580_v42 }
 0xeaf   :  { %v2810_v44 = vpop.eup %2809  ;;  %2678 = vmatpush3.msra.mxu0 %v1812_v43  ;;  %2679 = vmatprep.mubr.msk.f32.mxu0 %vm2879_vm1, %v2878_v16 }
 0xeb0   :  { %v1582_v45 = vmul.f32 %v2810_v44, %v2802_v24  ;;  %2690 = vmatprep.subr.bf16.mxu0 %v2878_v16 }
 0xeb2   :  { %2680 = vmatmul.mubr.msk.f32.vlgmr.msra.gmra.mxu0 %vm488_vm3, %v1582_v45 }
 0xeb3   :  { %2694 = vmatprep.mubr.msk.bf16.mxu0 %vm2879_vm1, %v2878_v16  ;;  %2691 = vmatpush3.bf16.msra.mxu0 %v2759_v27 }
 0xeb4   :  { %2692 = vmatprep.subr.bf16.mxu0 %v2878_v16 }
 0xeb7   :  { %2693 = vmatpush3.bf16.msra.mxu0 %v2760_v28 }
 0xeb8   :  { %2710 = vmatprep.subr.bf16.mxu0 %v2878_v16 }
 0xed2   :  { %v1565_v46 = vpop.xlane.xlu1 %1564 }
 0xed3   :  { %2811 = vrcp.f32 %v1565_v46 }
 0xed6   :  { %v1584_v47 = vpop.permute.xlu1 %1583  ;;  %v1571_v48 = vpop.xlane.xlu0 %1570 }
 0xed7   :  { %2813 = vrcp.f32 %v1571_v48  ;;  %2663 = vmatpush3.msra.mxu1 %v1584_v47  ;;  %v2761_v48 = vld [vmem:[%s3352_s6 + $0x38] sm:$0xff]  }
 0xed8   :  { %2672 = vmatprep.subr.mxu1 %v2878_v16 }
 0xeda   :  { %v1736_v57 = vpop.permute.xlu0 %1735 }
 0xee0   :  { %v2812_v52 = vpop.eup %2811 }
 0xee1   :  { %v1579_v56 = vmul.f32 %v2812_v52, %v2804_v33  ;;  %v2762_v52 = vld [vmem:[%s3352_s6 + $0x30] sm:$0xff]  }
 0xee3   :  { %2665 = vmatmul.mubr.msk.f32.vlgmr.msra.gmra.mxu1 %vm488_vm3, %v1579_v56  ;;  %v2763_v56 = vld [vmem:[%s3352_s6 + $0x28] sm:$0xff]  }
 0xee4   :  { %v2814_v58 = vpop.eup %2813  ;;  %2673 = vmatpush3.msra.mxu1 %v1736_v57  ;;  %2674 = vmatprep.mubr.msk.f32.mxu1 %vm2879_vm1, %v2878_v16  ;;  %v2764_v57 = vld [vmem:[%s3352_s6 + $0x20] sm:$0xff]  }
 0xee5   :  { %v1581_v59 = vmul.f32 %v2814_v58, %v2806_v36  ;;  %2682 = vmatprep.subr.bf16.mxu1 %v2878_v16 }
 0xee7   :  { %2675 = vmatmul.mubr.msk.f32.vlgmr.msra.gmra.mxu1 %vm488_vm3, %v1581_v59 }
 0xee8   :  { %2686 = vmatprep.mubr.msk.bf16.mxu1 %vm2879_vm1, %v2878_v16  ;;  %2683 = vmatpush3.bf16.msra.mxu1 %v2757_v60 }
 0xee9   :  { %2684 = vmatprep.subr.bf16.mxu1 %v2878_v16 }
 0xeec   :  { %2685 = vmatpush3.bf16.msra.mxu1 %v2758_v61 }
 0xeed   :  { %2698 = vmatprep.subr.bf16.mxu1 %v2878_v16 }
 0xf6e   :  { %v1731_v62 = vpop.f32.mrf.mxu0 }
 0xf70   :  { %v2671_v0 = vpop.f32.mrf.mxu0 }
 0xf72   :  { %v1883_v1 = vpop.f32.mrf.mxu0 }
 0xf73   :  { %v2740_v34 = vpack.i.bf16 %v1883_v1, %v1731_v62 }
 0xf74   :  { %v2681_v2 = vpop.f32.mrf.mxu0 }
 0xf75   :  { %2741 = vrot.lane.b32.xlu1 %v2740_v34, %s2882_s0 }
 0xf79   :  { %1921 = vrot.lane.b32.xlu1 %v3176_v54, %s2883_s24 }
 0xfa3   :  { %v1655_v3 = vpop.f32.mrf.mxu1 }
 0xfa5   :  { %v2666_v4 = vpop.f32.mrf.mxu1 }
 0xfa7   :  { %v1807_v5 = vpop.f32.mrf.mxu1 }
 0xfa9   :  { %v2676_v6 = vpop.f32.mrf.mxu1 }
 0xfe7   :  { %v2742_v7 = vpop.permute.xlu1 %2741 }
 0xfe8   :  { %v2744_v8 = vunpack.i.h.bf16 %v2742_v7  ;;  %v2743_v9 = vunpack.i.l.bf16 %v2742_v7 }
 0xfea   :  { %v1896_v10 = vsel %vm185_vm2, %v1807_v5, %v2744_v8  ;;  %v1891_v11 = vsel %vm185_vm2, %v1655_v3, %v2743_v9 }
 0xfeb   :  { %v1897_v12 = vpack.c.bf16 %v1896_v10, %v1891_v11  ;;  %v1922_v31 = vpop.permute.xlu1 %1921 }
 0xfed   :  { %2687 = vmatmul.mubr.msk.bf16.vlgmr.msra.gmra.mxu1 %vm43_vm0, %v1897_v12 }
 0xfee   :  { %2706 = vmatprep.mubr.msk.bf16.mxu1 %vm2879_vm1, %v2878_v16  ;;  %2699 = vmatpush3.bf16.msra.mxu1 %v2761_v48 }
 0xfef   :  { %2700 = vmatprep.subr.bf16.mxu1 %v2878_v16 }
 0xff2   :  { %2701 = vmatpush3.bf16.msra.mxu1 %v2762_v52 }
 0xff3   :  { %2702 = vmatprep.subr.bf16.mxu1 %v2878_v16 }
 0xff6   :  { %2703 = vmatpush3.bf16.msra.mxu1 %v2763_v56 }
 0xff7   :  { %2704 = vmatprep.subr.bf16.mxu1 %v2878_v16 }
 0xffa   :  { %2705 = vmatpush3.bf16.msra.mxu1 %v2764_v57 }
0x10ad   :  { %v1961_v13 = vpop.f32.mrf.mxu1 }
0x10ae   :  { %v1962_v54 = vadd.f32 %v1961_v13, %v1922_v31 }
0x10af   :  { %v2688_v14 = vpop.f32.mrf.mxu1 }
0x10b0   :  { %v1968_v15 = vadd.f32 %v1962_v54, %v3164_v50 }
0x10b1   :  { %v1964_v17 = vpop.f32.mrf.mxu1 }
0x10b2   :  { %v1965_v18 = vadd.f32 %v1964_v17, %v1922_v31  ;;  %v1971_v49 = vsel %vm43_vm0, %v1968_v15, 0.0 }
0x10b3   :  { %1972 = vadd.xlane.f32.xlu1 %v1971_v49  ;;  %v2689_v32 = vpop.f32.mrf.mxu1  ;;  %v2481_v49 = vld [vmem:[%s3354_s8 + $0x5] ss:$0 sm:$0xff] }
0x10b4   :  { %v1969_v19 = vadd.f32 %v1965_v18, %v3166_v51 }
0x10b6   :  { %v1974_v20 = vsel %vm43_vm0, %v1969_v19, 0.0 }
0x10b7   :  { %1975 = vadd.xlane.f32.xlu0 %v1974_v20 }
0x10c4   :  { %2004 = vrot.lane.b32.xlu1 %v2465_v21, %s2877_s23 }
0x113c   :  { %v1973_v53 = vpop.xlane.xlu1 %1972 }
0x113d   :  { %v1977_v22 = vmul.f32 0.03125, %v1973_v53 }
0x113f   :  { %v1979_v50 = vsub.f32 %v1968_v15, %v1977_v22 }
0x1140   :  { %v1976_v55 = vpop.xlane.xlu0 %1975  ;;  %v2005_v43 = vpop.permute.xlu1 %2004 }
0x1141   :  { %v1978_v23 = vmul.f32 0.03125, %v1976_v55  ;;  %v1981_v24 = vmul.f32 %v1979_v50, %v1979_v50 }
0x1143   :  { %v1980_v63 = vsub.f32 %v1969_v19, %v1978_v23  ;;  %v1983_v25 = vsel %vm43_vm0, %v1981_v24, 0.0 }
0x1144   :  { %1984 = vadd.xlane.f32.xlu0 %v1983_v25 }
0x1145   :  { %v1982_v51 = vmul.f32 %v1980_v63, %v1980_v63 }
0x1147   :  { %v1986_v26 = vsel %vm43_vm0, %v1982_v51, 0.0 }
0x1148   :  { %1987 = vadd.xlane.f32.xlu0 %v1986_v26 }
0x115e   :  { %2027 = vrot.lane.b32.xlu0 %v2465_v21, %s2881_s1 }
0x11cd   :  { %v1985_v29 = vpop.xlane.xlu0 %1984 }
0x11ce   :  { %v1989_v30 = vmul.f32 0.03125, %v1985_v29 }
0x11d0   :  { %v1991_v33 = vadd.f32 1e-05, %v1989_v30 }
0x11d1   :  { %v1988_v35 = vpop.xlane.xlu0 %1987 }
0x11d2   :  { %2815 = vrsqrt.f32 %v1991_v33  ;;  %v1990_v36 = vmul.f32 0.03125, %v1988_v35 }
0x11d4   :  { %v1992_v37 = vadd.f32 1e-05, %v1990_v36  ;;  %v2765_v36 = vld [vmem:[%s3353_s7 + $0x8] sm:$0xff]  }
0x11d5   :  { %v2028_v58 = vpop.permute.xlu0 %2027 }
0x11d6   :  { %2817 = vrsqrt.f32 %v1992_v37  ;;  %v2766_v37 = vld [vmem:[%s3353_s7] sm:$0xff]  }
0x11df   :  { %v2816_v38 = vpop.eup %2815 }
0x11e0   :  { %v1995_v39 = vmul.f32 %v2816_v38, %v1979_v50  ;;  %v2487_v38 = vld [vmem:[%s3355_s9] ss:$0 sm:$0xff] }
0x11e2   :  { %v2001_v42 = vmul.f32 %v2465_v21, %v1995_v39 }
0x11e3   :  { %v2818_v40 = vpop.eup %2817 }
0x11e4   :  { %v1996_v41 = vmul.f32 %v2818_v40, %v1980_v63  ;;  %v2007_v45 = vadd.f32 %v2005_v43, %v2001_v42 }
0x11e6   :  { %v2002_v44 = vmul.f32 %v2465_v21, %v1996_v41 }
0x11e8   :  { %v2008_v46 = vadd.f32 %v2005_v43, %v2002_v44 }
0x11ea   :  { %v2009_v47 = vpack.c.bf16 %v2008_v46, %v2007_v45 }
0x11ec   :  { %2695 = vmatmul.mubr.msk.bf16.vlgmr.msra.gmra.mxu0 %vm43_vm0, %v2009_v47 }
0x11ed   :  { %2714 = vmatprep.mubr.msk.bf16.mxu0 %vm2879_vm1, %v2878_v16  ;;  %2711 = vmatpush3.bf16.msra.mxu0 %v2765_v36 }
0x11ee   :  { %2712 = vmatprep.subr.bf16.mxu0 %v2878_v16 }
0x11f1   :  { %2713 = vmatpush3.bf16.msra.mxu0 %v2766_v37 }
0x11f2   :  { %2718 = vmatprep.subr.bf16.mxu0 %v2878_v16 }
0x12ac   :  { %v2067_v59 = vpop.f32.mrf.mxu0 }
0x12ad   :  { %v2068_v60 = vadd.f32 %v2067_v59, %v2028_v58 }
0x12ae   :  { %v2696_v61 = vpop.f32.mrf.mxu0 }
0x12af   :  { %v2074_v62 = vmul.f32 %v2068_v60, %v2068_v60 }
0x12b0   :  { %v2070_v0 = vpop.f32.mrf.mxu0 }
0x12b1   :  { %v2076_v1 = vmul.f32 %v2074_v62, %v2068_v60  ;;  %v2071_v34 = vadd.f32 %v2070_v0, %v2028_v58 }
0x12b2   :  { %v2697_v2 = vpop.f32.mrf.mxu0 }
0x12b3   :  { %v2078_v3 = vmul.f32 0.044715, %v2076_v1  ;;  %v2075_v4 = vmul.f32 %v2071_v34, %v2071_v34 }
0x12b5   :  { %v2080_v5 = vadd.f32 %v2078_v3, %v2068_v60  ;;  %v2077_v6 = vmul.f32 %v2075_v4, %v2071_v34 }
0x12b7   :  { %v2082_v7 = vmul.f32 0.7978846, %v2080_v5  ;;  %v2079_v8 = vmul.f32 0.044715, %v2077_v6 }
0x12b9   :  { %2819 = vtanh.f32 %v2082_v7  ;;  %v2081_v9 = vadd.f32 %v2079_v8, %v2071_v34 }
0x12bb   :  { %v2083_v10 = vmul.f32 0.7978846, %v2081_v9 }
0x12bd   :  { %2821 = vtanh.f32 %v2083_v10 }
0x12c6   :  { %v2820_v11 = vpop.eup %2819 }
0x12c7   :  { %v2086_v12 = vadd.f32 1.0, %v2820_v11 }
0x12c9   :  { %v2088_v13 = vmul.f32 0.5, %v2086_v12 }
0x12ca   :  { %v2822_v31 = vpop.eup %2821 }
0x12cb   :  { %v2087_v54 = vadd.f32 1.0, %v2822_v31  ;;  %v2090_v15 = vmul.f32 %v2088_v13, %v2068_v60 }
0x12cd   :  { %v2089_v14 = vmul.f32 0.5, %v2087_v54 }
0x12cf   :  { %v2091_v17 = vmul.f32 %v2089_v14, %v2071_v34 }
0x12d1   :  { %v2092_v18 = vpack.c.bf16 %v2091_v17, %v2090_v15 }
0x12d3   :  { %2707 = vmatmul.mubr.msk.bf16.vlgmr.msra.gmra.mxu1 %vm1078_vm4, %v2092_v18 }
0x1393   :  { %v2168_v32 = vpop.f32.mrf.mxu1 }
0x1394   :  { %v2169_v19 = vadd.f32 %v2481_v49, %v2168_v32 }
0x1395   :  { %v2708_v20 = vpop.f32.mrf.mxu1 }
0x1396   :  { %v2175_v21 = vadd.f32 %v2169_v19, %v2007_v45 }
0x1397   :  { %v2171_v53 = vpop.f32.mrf.mxu1 }
0x1398   :  { %v2172_v22 = vadd.f32 %v2481_v49, %v2171_v53  ;;  %v2177_v50 = vsel %vm43_vm0, %v2175_v21, 0.0  ;;  %v2356_v53 = vld [vmem:[%s3348_s2] sm:$0x3] }
0x1399   :  { %2178 = vadd.xlane.f32.xlu0 %v2177_v50  ;;  %v2709_v55 = vpop.f32.mrf.mxu1 }
0x139a   :  { %v2176_v23 = vadd.f32 %v2172_v22, %v2008_v46 }
0x139c   :  { %v2180_v24 = vsel %vm43_vm0, %v2176_v23, 0.0 }
0x139d   :  { %2181 = vadd.xlane.f32.xlu1 %v2180_v24 }
0x1422   :  { %v2179_v63 = vpop.xlane.xlu0 %2178 }
0x1423   :  { %v2183_v25 = vmul.f32 0.03125, %v2179_v63 }
0x1425   :  { %v2185_v51 = vsub.f32 %v2175_v21, %v2183_v25 }
0x1426   :  { %v2182_v26 = vpop.xlane.xlu1 %2181 }
0x1427   :  { %v2184_v27 = vmul.f32 0.03125, %v2182_v26  ;;  %v2187_v28 = vmul.f32 %v2185_v51, %v2185_v51 }
0x1429   :  { %v2186_v29 = vsub.f32 %v2176_v23, %v2184_v27  ;;  %v2189_v30 = vsel %vm43_vm0, %v2187_v28, 0.0 }
0x142a   :  { %2190 = vadd.xlane.f32.xlu0 %v2189_v30 }
0x142b   :  { %v2188_v33 = vmul.f32 %v2186_v29, %v2186_v29 }
0x142d   :  { %v2192_v35 = vsel %vm43_vm0, %v2188_v33, 0.0 }
0x142e   :  { %2193 = vadd.xlane.f32.xlu1 %v2192_v35 }
0x143f   :  { %2204 = vrot.lane.b32.xlu1 %v2481_v49, %s2877_s23 }
0x1440   :  { %2209 = vrot.lane.b32.xlu0 %v2481_v49, %s2881_s1 }
0x1443   :  { %2242 = vrot.lane.b32.xlu1 %v2487_v38, %s2881_s1 }
0x1444   :  { %2296 = vrot.lane.b32.xlu0 %v2487_v38, %s2883_s24 }
0x1447   :  { %2292 = vrot.lane.b32.xlu1 %v2765_v36, %s2877_s23 }
0x144b   :  { %2290 = vrot.lane.b32.xlu1 %v2766_v37, %s2877_s23  ;;  %s2884_s23 = smov [#allocation2]  }
0x144c   :  { %s2380_s1 = sshll.u32 %s2884_s23, 4  ;;  %s2381_s1 = int_to_ptr.vmem [resolvable:$true] %s2380_s1 }
0x144d   :  { %s2833_s24 = scalar_lea.vmem %s2381_s1, 32  ;;  %p2838_p1 = scmp.lt.s32.totalorder %s2381_s1, %s2381_s1 }
0x144e   :  { %p2834_p0 = scmp.ne.s32.totalorder %s2381_s1, %s2833_s24  ;;  %p2839_p2 = scmp.lt.s32.totalorder %s2833_s24, %s2833_s24 }
0x1450   :  { %p2840_p3 = por %p2839_p2, %p2838_p1 }
0x1452   :  { %p2841_p4 = pnand %p2840_p3, %p2834_p0 }
0x14b3   :  { %v2191_v39 = vpop.xlane.xlu0 %2190 }
0x14b4   :  { %v2195_v40 = vmul.f32 0.03125, %v2191_v39 }
0x14b6   :  { %v2197_v41 = vadd.f32 1e-05, %v2195_v40 }
0x14b7   :  { %v2194_v42 = vpop.xlane.xlu1 %2193  ;;  %v2210_v58 = vpop.permute.xlu0 %2209 }
0x14b8   :  { %2823 = vrsqrt.f32 %v2197_v41  ;;  %v2196_v43 = vmul.f32 0.03125, %v2194_v42 }
0x14ba   :  { %v2198_v44 = vadd.f32 1e-05, %v2196_v43 }
0x14bb   :  { %v2205_v48 = vpop.permute.xlu1 %2204  ;;  %v2297_v10 = vpop.permute.xlu0 %2296 }
0x14bc   :  { %2825 = vrsqrt.f32 %v2198_v44 }
0x14bf   :  { %v2243_v1 = vpop.permute.xlu1 %2242 }
0x14c3   :  { %v2293_v34 = vpop.permute.xlu1 %2292 }
0x14c5   :  { %v2824_v45 = vpop.eup %2823 }
0x14c6   :  { %v2201_v46 = vmul.f32 %v2824_v45, %v2185_v51 }
0x14c7   :  { %v2291_v2 = vpop.permute.xlu1 %2290 }
0x14c8   :  { %v2207_v56 = vmul.f32 %v2205_v48, %v2201_v46 }
0x14c9   :  { %v2826_v47 = vpop.eup %2825 }
0x14ca   :  { %v2202_v52 = vmul.f32 %v2826_v47, %v2186_v29  ;;  %v2212_v60 = vadd.f32 %v2210_v58, %v2207_v56 }
0x14cc   :  { %v2208_v57 = vmul.f32 %v2205_v48, %v2202_v52 }
0x14ce   :  { %v2213_v59 = vadd.f32 %v2210_v58, %v2208_v57 }
0x14d0   :  { %v2215_v61 = vrot.slane %v2213_v59, 7 }
0x14d2   :  { %v2218_v62 = vsel %vm2217_vm5, %v2212_v60, %v2215_v61 }
0x14d3   :  { %v2219_v0 = vpack.c.bf16 %v2218_v62, %v2218_v62 }
0x14d5   :  { %2715 = vmatmul.mubr.msk.bf16.vlgmr.msra.gmra.mxu0 %vm43_vm0, %v2219_v0 }
0x14d6   :  { %2722 = vmatprep.mubr.msk.bf16.mxu0 %vm2879_vm1, %v2878_v16  ;;  %2719 = vmatpush3.bf16.msra.mxu0 %v2293_v34 }
0x14d7   :  { %2720 = vmatprep.subr.bf16.mxu0 %v2878_v16 }
0x14da   :  { %2721 = vmatpush3.bf16.msra.mxu0 %v2291_v2 }
0x1595   :  { %v2282_v3 = vpop.f32.mrf.mxu0 }
0x1596   :  { %v2283_v4 = vadd.f32 %v2282_v3, %v2243_v1 }
0x1597   :  { %v2716_v5 = vpop.f32.mrf.mxu0 }
0x1598   :  { %2827 = vtanh.f32 %v2283_v4 }
0x1599   :  { %v2285_v6 = vpop.f32.mrf.mxu0 }
0x159b   :  { %v2717_v7 = vpop.f32.mrf.mxu0 }
0x15a5   :  { %v2828_v8 = vpop.eup %2827 }
0x15a6   :  { %v2289_v9 = vpack.c.bf16 %v2828_v8, %v2828_v8 }
0x15a8   :  { %2723 = vmatmul.mubr.msk.bf16.vlgmr.msra.gmra.mxu0 %vm43_vm0, %v2289_v9 }
0x1668   :  { %v2336_v11 = vpop.f32.mrf.mxu0 }
0x1669   :  { %v2337_v12 = vadd.f32 %v2336_v11, %v2297_v10 }
0x166a   :  { %v2724_v31 = vpop.f32.mrf.mxu0 }
0x166b   :  { %v2344_v13 = vsel %vm2342_vm6, %v2337_v12, -inf  ;;  %2343 = vst.msk [vmem:[#allocation2] sm:$0x3] %vm2342_vm6, %v2337_v12 }
0x166c   :  { %2345 = vmax.xlane.f32.xlu1 %v2344_v13  ;;  %v2339_v16 = vpop.f32.mrf.mxu0 }
0x166e   :  { %v2725_v54 = vpop.f32.mrf.mxu0 }
0x16f5   :  { %v2346_v14 = vpop.xlane.xlu1 %2345 }
0x16f6   :  { %v2347_v15 = vsub.f32 %v2337_v12, %v2346_v14 }
0x16f8   :  { %v2348_v17 = vmul.f32 1.442695, %v2347_v15 }
0x16fa   :  { %2829 = vpow2.f32 %v2348_v17 }
0x1707   :  { %v2830_v18 = vpop.eup %2829 }
0x1708   :  { %v2350_v49 = vsel %vm2342_vm6, %v2830_v18, 0.0 }
0x1709   :  { %2351 = vadd.xlane.f32.xlu0 %v2350_v49 }
0x1792   :  { %v2352_v32 = vpop.xlane.xlu0 %2351 }
0x1793   :  { %2831 = vlog2.f32 %v2352_v32 }
0x17a0   :  { %v2832_v19 = vpop.eup %2831 }
0x17a1   :  { %v2354_v20 = vmul.f32 0.6931472, %v2832_v19 }
0x17a3   :  { %v2355_v21 = vadd.f32 %v2354_v20, %v2346_v14 }
0x17a5   :  { %v2357_v22 = vsub.f32 %v2337_v12, %v2355_v21 }
0x17a7   :  { %v2358_v50 = vmul.f32 %v2357_v22, %v2356_v53 }
0x17a9   :  { %v2359_v55 = vsel %vm2342_vm6, %v2358_v50, 0.0 }
0x17aa   :  { %2360 = vadd.xlane.f32.xlu0 %v2359_v55 }
0x17ab   :  { %2844 = shalt.err (!%p2841_p4)
}
0x17ac   :  { %2383 = dma.vmem_to_hbm [thread:$0]  %s2381_s1, 32, %s3356_s10, [#allocation3]   ;;  %vm2363_vm7 = vcmask 1041408   ;;  %vm2372_vm8 = vcmask 0  }
0x17ad   :  { %s2885_s2 = smov [#allocation4]  }
0x17ae   :  { %s2390_s0 = sshll.u32 %s2885_s2, 4  ;;  %s2391_s0 = int_to_ptr.vmem [resolvable:$true] %s2390_s0 }
0x17af   :  { %s2853_s15 = scalar_lea.vmem %s2391_s0, 16  ;;  %s2857_s16 = scalar_lea.vmem %s2391_s0, 32 }
0x17b0   :  { %p2854_p5 = scmp.ne.s32.totalorder %s2391_s0, %s2853_s15  ;;  %p2858_p6 = scmp.lt.s32.totalorder %s2391_s0, %s2391_s0 }
0x17b1   :  { %p2859_p7 = scmp.lt.s32.totalorder %s2857_s16, %s2853_s15 }
0x17b3   :  { %p2860_p8 = por %p2859_p7, %p2858_p6 }
0x17b5   :  { %p2861_p9 = pnand %p2860_p8, %p2854_p5 }
0x1833   :  { %v2361_v23 = vpop.xlane.xlu0 %2360 }
0x1834   :  { %v2362_v24 = vsub.f32 0.0, %v2361_v23 }
0x1836   :  { %v2364_v63 = vsel %vm2363_vm7, %v2362_v24, 0.0 }
0x1837   :  { %v2365_v25 = vrot.slane %v2364_v63, 4 }
0x1839   :  { %v2366_v51 = vadd.f32 %v2365_v25, %v2364_v63 }
0x183b   :  { %v2367_v26 = vrot.slane %v2366_v51, 2 }
0x183d   :  { %v2368_v27 = vadd.f32 %v2367_v26, %v2366_v51 }
0x183f   :  { %v2369_v28 = vrot.slane %v2368_v27, 1 }
0x1841   :  { %v2370_v29 = vadd.f32 %v2369_v28, %v2368_v27 }
0x1843   :  { %v2371_v30 = vmul.f32 0.5, %v2370_v29 }
0x1845   :  { %2373 = vst.msk [vmem:[#allocation4] sm:$0x1] %vm2372_vm8, %v2371_v30 }
0x1846   :  { %2864 = shalt.err (!%p2861_p9)
}
0x1847   :  { %2393 = dma.vmem_to_hbm [thread:$0]  %s2391_s0, 16, %s3357_s11, [#allocation5]  }
0x1848   :  { %2873 = dma.done.wait [#allocation3], 32  }
0x1849   :  { %2874 = vsyncadd [#allocation3], 4294967264 }
0x184a   :  { %2875 = dma.done.wait [#allocation5], 16  }
0x184b   :  { %2876 = vsyncadd [#allocation5], 4294967280 }
0x184c   :  { %2400 = vsyncpa [#allocation3], 1 }
0x184d   :  { %2401 = vsyncpa [#allocation5], 1 }

</bundles_post_ra>
